<compile_context>
chip_gen: v7x
topology: tpu7x:2x2x1
jax: 0.10.0
libtpu: 0.0.40
codegen_flags: <defaults>
</compile_context>

<pallas_src>
import math
from functools import partial

import jax
import jax.numpy as jnp
from jax.experimental import pallas as pl
from jax.experimental.pallas import tpu as pltpu

# Deterministic kernel hyper-parameters (synthetic, no checkpoint load).
LENGTHSCALE = 1.5
VARIANCE = 0.8
NEG_HALF_INV_L2 = -0.5 / (LENGTHSCALE * LENGTHSCALE)
INV_L2 = 1.0 / (LENGTHSCALE * LENGTHSCALE)        # = -2 * NEG_HALF_INV_L2
LOG_VARIANCE = math.log(VARIANCE)


def _vmem_limit_bytes():
    try:
        cap = int(pltpu.get_tpu_info().vmem_capacity_bytes)
    except Exception:
        cap = 64 * 1024 * 1024   # conservative fallback (v7x physical)
    return min(int(cap * 0.7), 100 * 1024 * 1024)


_VMEM_LIMIT = _vmem_limit_bytes()


def _round_up(x, m):
    return (x + m - 1) // m * m


def _pick_tile(padded_dim, candidates):
    """Largest candidate tile that evenly divides the (already padded) dim."""
    for c in candidates:
        if padded_dim % c == 0:
            return c
    return padded_dim


# ----------------------------------------------------------------------------
# Pallas kernel 1: tiled RBF kernel matrix.
#   out[b, i, j] = exp(min(a_row_i + a_col_j + <x_i, y_j>/L^2, log V))
# Row locations arrive as (tm, D); column locations arrive pre-transposed as
# (D, tn) so the column squared-norm is a sublane reduce (lane-dense row) and
# the cross term hits the MXU with no relayout. exp goes to the EUP.
# ----------------------------------------------------------------------------
def _rbf_body(xa_ref, xbt_ref, k_ref):
    xa = xa_ref[0].astype(jnp.float32)                          # (tm, D)
    xbt = xbt_ref[0].astype(jnp.float32)                        # (D, tn)
    a_row = NEG_HALF_INV_L2 * jnp.sum(xa * xa, axis=-1, keepdims=True)     # (tm, 1)
    a_col = (NEG_HALF_INV_L2 * jnp.sum(xbt * xbt, axis=0, keepdims=True)
             + LOG_VARIANCE)                                                # (1, tn)
    cross = jnp.dot(xa, xbt, preferred_element_type=jnp.float32)            # (tm, tn)
    arg = jnp.minimum(a_row + a_col + INV_L2 * cross, LOG_VARIANCE)
    k_ref[0] = jnp.exp(arg).astype(k_ref.dtype)


def _rbf_forward_padded(loc_a, loc_b_t):
    """RBF matrix for padded inputs: loc_a (B, Rp, D), loc_b_t (B, D, Cp)."""
    B, Rp, D = loc_a.shape
    _, _, Cp = loc_b_t.shape
    tm = _pick_tile(Rp, (512, 256, 128, 64, 32, 16, 8))
    tn = _pick_tile(Cp, (1024, 512, 256, 128))
    return pl.pallas_call(
        _rbf_body,
        out_shape=jax.ShapeDtypeStruct((B, Rp, Cp), loc_a.dtype),
        grid_spec=pltpu.PrefetchScalarGridSpec(
            num_scalar_prefetch=0,
            grid=(B, Rp // tm, Cp // tn),
            in_specs=[
                pl.BlockSpec((1, tm, D), lambda b, i, j: (b, i, 0)),
                pl.BlockSpec((1, D, tn), lambda b, i, j: (b, 0, j)),
            ],
            out_specs=pl.BlockSpec((1, tm, tn), lambda b, i, j: (b, i, j)),
        ),
        compiler_params=pltpu.CompilerParams(
            dimension_semantics=("parallel", "parallel", "parallel"),
            vmem_limit_bytes=_VMEM_LIMIT),
    )(loc_a, loc_b_t)


def rbf_forward(loc1, loc2):
    """Kernel.forward(locations1, locations2) -> [B, M, N] kernel matrix."""
    B, M, D = loc1.shape
    _, N, _ = loc2.shape
    Mr = _round_up(M, 8)           # rows: sublane quantum only
    Np = _round_up(N, 128)         # cols: lane quantum
    loc1p = jnp.pad(loc1, ((0, 0), (0, Mr - M), (0, 0)))
    loc2t = jnp.pad(jnp.swapaxes(loc2, 1, 2), ((0, 0), (0, 0), (0, Np - N)))
    return _rbf_forward_padded(loc1p, loc2t)[:, :M, :N]


# ----------------------------------------------------------------------------
# Pallas kernel 2 (fused): build a (tt, tk) tile of K_TM and immediately
# accumulate K_TM_tile @ K_MM_inv[k_panel, :] directly into the f32 prod
# output block, which stays VMEM-resident across the contraction (k) axis.
# When K_MM_inv fits VMEM it is loaded as one full (Mp, Mp) block per batch
# (no re-streaming per T tile); otherwise it is streamed as (tk, Mp) panels.
# ----------------------------------------------------------------------------
def _fused_ktm_body(kinv_full, x2_ref, x1t_ref, kinv_ref, ktm_ref, prod_ref):
    k = pl.program_id(2)

    x2 = x2_ref[0].astype(jnp.float32)                          # (tt, D)
    x1t = x1t_ref[0].astype(jnp.float32)                        # (D, tk)
    tk = x1t.shape[1]

    a_row = NEG_HALF_INV_L2 * jnp.sum(x2 * x2, axis=-1, keepdims=True)      # (tt, 1)
    a_col = (NEG_HALF_INV_L2 * jnp.sum(x1t * x1t, axis=0, keepdims=True)
             + LOG_VARIANCE)                                                 # (1, tk)
    cross = jnp.dot(x2, x1t, preferred_element_type=jnp.float32)             # (tt, tk)
    ktm = jnp.exp(jnp.minimum(a_row + a_col + INV_L2 * cross, LOG_VARIANCE))
    ktm_ref[0] = ktm.astype(ktm_ref.dtype)

    @pl.when(k == 0)
    def _():
        prod_ref[...] = jnp.zeros_like(prod_ref)

    if kinv_full:
        off = pl.multiple_of(k * tk, tk)
        kinv_blk = kinv_ref[0, pl.ds(off, tk), :].astype(jnp.float32)        # (tk, Mp)
    else:
        kinv_blk = kinv_ref[0].astype(jnp.float32)                           # (tk, Mp)

    # Direct f32 accumulation into the resident output block (no scratch).
    prod_ref[0] += jnp.dot(ktm, kinv_blk, preferred_element_type=jnp.float32)


def _fused_ktm_product(loc2_rows, loc1_cols_t, kinv_p):
    """Returns (K_TM_padded, (K_TM @ K_MM_inv)_padded), both (B, Tp, Mp)."""
    B, Tp, D = loc2_rows.shape
    _, _, Mp = loc1_cols_t.shape
    dtype = loc2_rows.dtype

    if Mp <= 1024:
        tt = _pick_tile(Tp, (512, 256, 128, 64, 32, 16, 8))
        tk = _pick_tile(Mp, (512, 256, 128))
    else:
        # TODO(synk): for very large M, add a column-tile axis over Mp instead
        # of shrinking tiles, so kinv/prod VMEM stays O(tile) not O(Mp).
        tt = _pick_tile(Tp, (256, 128, 64, 32, 16, 8))
        tk = _pick_tile(Mp, (256, 128))

    # Fetch K_MM_inv once per batch when it comfortably fits VMEM.
    kinv_full = (2 * Mp * Mp * 4) <= (_VMEM_LIMIT // 3)
    if kinv_full:
        kinv_spec = pl.BlockSpec((1, Mp, Mp), lambda b, t, k: (b, 0, 0))
    else:
        kinv_spec = pl.BlockSpec((1, tk, Mp), lambda b, t, k: (b, k, 0))

    return pl.pallas_call(
        partial(_fused_ktm_body, kinv_full),
        out_shape=(jax.ShapeDtypeStruct((B, Tp, Mp), dtype),
                   jax.ShapeDtypeStruct((B, Tp, Mp), jnp.float32)),
        grid_spec=pltpu.PrefetchScalarGridSpec(
            num_scalar_prefetch=0,
            grid=(B, Tp // tt, Mp // tk),
            in_specs=[
                pl.BlockSpec((1, tt, D), lambda b, t, k: (b, t, 0)),
                pl.BlockSpec((1, D, tk), lambda b, t, k: (b, 0, k)),
                kinv_spec,
            ],
            out_specs=[
                pl.BlockSpec((1, tt, tk), lambda b, t, k: (b, t, k)),
                pl.BlockSpec((1, tt, Mp), lambda b, t, k: (b, t, 0)),
            ],
        ),
        compiler_params=pltpu.CompilerParams(
            dimension_semantics=("parallel", "parallel", "arbitrary"),
            vmem_limit_bytes=_VMEM_LIMIT),
    )(loc2_rows, loc1_cols_t, kinv_p)


# ----------------------------------------------------------------------------
# Kernel.posteriors — mirrors the PyTorch helper.
# ----------------------------------------------------------------------------
def posteriors(locations1, locations2):
    B, M, D = locations1.shape
    _, T, _ = locations2.shape
    dtype = locations1.dtype

    Mp = _round_up(M, 128)      # lane-padded extent (columns / contraction)
    Mr = _round_up(M, 8)        # sublane-padded extent (rows only)
    Tr = _round_up(T, 8)

    loc1_rows = jnp.pad(locations1, ((0, 0), (0, Mr - M), (0, 0)))           # (B, Mr, D)
    loc1_cols_t = jnp.pad(jnp.swapaxes(locations1, 1, 2),
                          ((0, 0), (0, 0), (0, Mp - M)))                     # (B, D, Mp)
    loc2_rows = jnp.pad(locations2, ((0, 0), (0, Tr - T), (0, 0)))           # (B, Tr, D)

    # K_MM (padded build, slice back before the inverse).
    K_MM = _rbf_forward_padded(loc1_rows, loc1_cols_t)[:, :M, :M]
    Id = 1e-06 * jnp.eye(M, dtype=dtype)                                     # diagonalize(ones)
    # TODO(synk): torch.linalg.inv has no clean Pallas equivalent; plain JAX here
    # (a Cholesky solve would be cheaper/stabler, but K_MM_inv is a required output).
    K_MM_inv = jnp.linalg.inv(K_MM + Id)                                     # (B, M, M)

    # Zero-pad the inverse to (Mp, Mp): padded K_TM columns hit zero rows and
    # contribute nothing to the product.
    K_MM_inv_p = jnp.pad(K_MM_inv, ((0, 0), (0, Mp - M), (0, Mp - M)))

    K_TM_p, prod_p = _fused_ktm_product(loc2_rows, loc1_cols_t, K_MM_inv_p)
    K_TM = K_TM_p[:, :T, :M]
    K_TM_K_MM_inv = prod_p[:, :T, :M].astype(dtype)

    # Diagonal of the RBF kernel at zero distance is exactly VARIANCE — no need
    # to build the full (B, T, T) matrix and extract its diagonal.
    K_T = jnp.full((B, T), VARIANCE, dtype=dtype)

    return K_T, K_MM, K_MM_inv, K_TM, K_TM_K_MM_inv


posteriors_jit = jax.jit(posteriors)


# ----------------------------------------------------------------------------
# Pure-JAX reference for correctness checking.
# ----------------------------------------------------------------------------
def _rbf_ref(loc1, loc2):
    d2 = jnp.sum((loc1[:, :, None, :] - loc2[:, None, :, :]) ** 2, axis=-1)
    return VARIANCE * jnp.exp(-0.5 * d2 / (LENGTHSCALE ** 2))


if __name__ == "__main__":
    key = jax.random.PRNGKey(0)
    k1, k2 = jax.random.split(key)

    B, M, T, D = 2, 16, 12, 8
    locations1 = jax.random.normal(k1, (B, M, D), dtype=jnp.float32)
    locations2 = jax.random.normal(k2, (B, T, D), dtype=jnp.float32)

    K_T, K_MM, K_MM_inv, K_TM, K_TM_K_MM_inv = jax.block_until_ready(
        posteriors_jit(locations1, locations2))

    # Sanity checks against a pure-JAX reference.
    ref_K_MM = _rbf_ref(locations1, locations1)
    ref_K_TM = _rbf_ref(locations2, locations1)
    ref_inv = jnp.linalg.inv(ref_K_MM + 1e-06 * jnp.eye(M, dtype=jnp.float32))

    assert K_T.shape == (B, T) and K_MM.shape == (B, M, M)
    assert K_TM.shape == (B, T, M) and K_TM_K_MM_inv.shape == (B, T, M)
    assert jnp.allclose(K_MM, ref_K_MM, atol=1e-5, rtol=1e-5)
    assert jnp.allclose(K_TM, ref_K_TM, atol=1e-5, rtol=1e-5)
    assert jnp.allclose(K_T, jnp.full((B, T), VARIANCE, jnp.float32),
                        atol=1e-6, rtol=1e-6)
    # Fused product vs. explicit matmul of the returned factors (tight).
    assert jnp.allclose(K_TM_K_MM_inv,
                        jnp.einsum("btm,bmn->btn", K_TM, K_MM_inv),
                        atol=1e-5, rtol=1e-5)
    # And vs. the fully independent reference (looser: inverse conditioning).
    assert jnp.allclose(K_TM_K_MM_inv, ref_K_TM @ ref_inv, atol=1e-4, rtol=1e-4)

    # Standalone forward() wrapper check.
    assert jnp.allclose(rbf_forward(locations2, locations1), ref_K_TM,
                        atol=1e-5, rtol=1e-5)

    print("KERNEL_OK")
</pallas_src>

<mosaic_0001>
module attributes {stable_mosaic.version = 11 : i64} {
  func.func @_rbf_body(%arg0: i32, %arg1: i32, %arg2: i32, %arg3: memref<1x16x8xf32, #tpu.memory_space<vmem>>, %arg4: memref<1x8x128xf32, #tpu.memory_space<vmem>>, %arg5: memref<1x16x128xf32, #tpu.memory_space<vmem>>) attributes {dimension_semantics = [#tpu.dimension_semantics<parallel>, #tpu.dimension_semantics<parallel>, #tpu.dimension_semantics<parallel>], iteration_bounds = array<i64: 2, 1, 1>, scalar_prefetch = 0 : i64, scratch_operands = 0 : i64, tpu.core_type = #tpu.core_type<tc>, window_params = [{transform_indices = @transform_0, window_bounds = array<i64: 1, 16, 8>}, {transform_indices = @transform_1, window_bounds = array<i64: 1, 8, 128>}, {transform_indices = @transform_2, window_bounds = array<i64: 1, 16, 128>}]} {
    %c0 = arith.constant 0 : index
    %c0_0 = arith.constant 0 : index
    %c0_1 = arith.constant 0 : index
    %0 = vector.load %arg3[%c0, %c0_0, %c0_1] : memref<1x16x8xf32, #tpu.memory_space<vmem>>, vector<1x16x8xf32>
    %1 = vector.shape_cast %0 : vector<1x16x8xf32> to vector<16x8xf32>
    %c0_2 = arith.constant 0 : index
    %c0_3 = arith.constant 0 : index
    %c0_4 = arith.constant 0 : index
    %2 = vector.load %arg4[%c0_2, %c0_3, %c0_4] : memref<1x8x128xf32, #tpu.memory_space<vmem>>, vector<1x8x128xf32>
    %3 = vector.shape_cast %2 : vector<1x8x128xf32> to vector<8x128xf32>
    %4 = arith.mulf %1, %1 : vector<16x8xf32>
    %cst = arith.constant dense<0.000000e+00> : vector<16xf32>
    %5 = vector.multi_reduction <add>, %4, %cst [1] : vector<16x8xf32> to vector<16xf32>
    %6 = vector.shape_cast %5 : vector<16xf32> to vector<16x1xf32>
    %cst_5 = arith.constant -0.222222224 : f32
    %7 = vector.broadcast %cst_5 : f32 to vector<16x1xf32>
    %8 = arith.mulf %7, %6 : vector<16x1xf32>
    %9 = arith.mulf %3, %3 : vector<8x128xf32>
    %cst_6 = arith.constant dense<0.000000e+00> : vector<128xf32>
    %10 = vector.multi_reduction <add>, %9, %cst_6 [0] : vector<8x128xf32> to vector<128xf32>
    %11 = vector.shape_cast %10 : vector<128xf32> to vector<1x128xf32>
    %cst_7 = arith.constant -0.222222224 : f32
    %12 = vector.broadcast %cst_7 : f32 to vector<1x128xf32>
    %13 = arith.mulf %12, %11 : vector<1x128xf32>
    %cst_8 = arith.constant -0.223143548 : f32
    %14 = vector.broadcast %cst_8 : f32 to vector<1x128xf32>
    %15 = arith.addf %13, %14 : vector<1x128xf32>
    %cst_9 = arith.constant dense<0.000000e+00> : vector<16x128xf32>
    %16 = tpu.matmul %1, %3, %cst_9 {dimension_numbers = #tpu.dot_dimension_numbers<[1], [0], [0], [1], [0, 0, 1, 1], [], []>} : vector<16x8xf32>, vector<8x128xf32>, vector<16x128xf32> -> vector<16x128xf32>
    %17 = vector.broadcast %8 : vector<16x1xf32> to vector<16x128xf32>
    %18 = vector.broadcast %15 : vector<1x128xf32> to vector<16x128xf32>
    %19 = arith.addf %17, %18 : vector<16x128xf32>
    %cst_10 = arith.constant 0.444444448 : f32
    %20 = vector.broadcast %cst_10 : f32 to vector<16x128xf32>
    %21 = arith.mulf %20, %16 : vector<16x128xf32>
    %22 = arith.addf %19, %21 : vector<16x128xf32>
    %cst_11 = arith.constant -0.223143548 : f32
    %23 = vector.broadcast %cst_11 : f32 to vector<16x128xf32>
    %24 = arith.minimumf %22, %23 : vector<16x128xf32>
    %25 = math.exp %24 : vector<16x128xf32>
    %c0_12 = arith.constant 0 : index
    %c0_13 = arith.constant 0 : index
    %c0_14 = arith.constant 0 : index
    %26 = vector.load %arg5[%c0_12, %c0_13, %c0_14] : memref<1x16x128xf32, #tpu.memory_space<vmem>>, vector<1x16x128xf32>
    %27 = vector.shape_cast %26 : vector<1x16x128xf32> to vector<16x128xf32>
    %28 = vector.shape_cast %25 : vector<16x128xf32> to vector<1x16x128xf32>
    tpu.vector_store %arg5[%c0_12, %c0_13, %c0_14], %28 {strides = array<i32>} : memref<1x16x128xf32, #tpu.memory_space<vmem>>, vector<1x16x128xf32>,
    return
  }
  func.func @transform_0(%arg0: i32, %arg1: i32, %arg2: i32) -> (i32, i32, i32) {
    %c0_i32 = arith.constant 0 : i32
    %c0_i32_0 = arith.constant 0 : i32
    return %arg0, %arg1, %c0_i32 : i32, i32, i32
  }
  func.func @transform_1(%arg0: i32, %arg1: i32, %arg2: i32) -> (i32, i32, i32) {
    %c0_i32 = arith.constant 0 : i32
    %c0_i32_0 = arith.constant 0 : i32
    return %arg0, %c0_i32, %arg2 : i32, i32, i32
  }
  func.func @transform_2(%arg0: i32, %arg1: i32, %arg2: i32) -> (i32, i32, i32) {
    %c0_i32 = arith.constant 0 : i32
    return %arg0, %arg1, %arg2 : i32, i32, i32
  }
}

module attributes {stable_mosaic.version = 11 : i64} {
  func.func @_fused_ktm_body(%arg0: i32, %arg1: i32, %arg2: i32, %arg3: memref<1x16x8xf32, #tpu.memory_space<vmem>>, %arg4: memref<1x8x128xf32, #tpu.memory_space<vmem>>, %arg5: memref<1x128x128xf32, #tpu.memory_space<vmem>>, %arg6: memref<1x16x128xf32, #tpu.memory_space<vmem>>, %arg7: memref<1x16x128xf32, #tpu.memory_space<vmem>>) attributes {dimension_semantics = [#tpu.dimension_semantics<parallel>, #tpu.dimension_semantics<parallel>, #tpu.dimension_semantics<arbitrary>], iteration_bounds = array<i64: 2, 1, 1>, scalar_prefetch = 0 : i64, scratch_operands = 0 : i64, tpu.core_type = #tpu.core_type<tc>, window_params = [{transform_indices = @transform_0, window_bounds = array<i64: 1, 16, 8>}, {transform_indices = @transform_1, window_bounds = array<i64: 1, 8, 128>}, {transform_indices = @transform_2, window_bounds = array<i64: 1, 128, 128>}, {transform_indices = @transform_3, window_bounds = array<i64: 1, 16, 128>}, {transform_indices = @transform_4, window_bounds = array<i64: 1, 16, 128>}]} {
    %c0 = arith.constant 0 : index
    %c0_0 = arith.constant 0 : index
    %c0_1 = arith.constant 0 : index
    %0 = vector.load %arg3[%c0, %c0_0, %c0_1] : memref<1x16x8xf32, #tpu.memory_space<vmem>>, vector<1x16x8xf32>
    %1 = vector.shape_cast %0 : vector<1x16x8xf32> to vector<16x8xf32>
    %c0_2 = arith.constant 0 : index
    %c0_3 = arith.constant 0 : index
    %c0_4 = arith.constant 0 : index
    %2 = vector.load %arg4[%c0_2, %c0_3, %c0_4] : memref<1x8x128xf32, #tpu.memory_space<vmem>>, vector<1x8x128xf32>
    %3 = vector.shape_cast %2 : vector<1x8x128xf32> to vector<8x128xf32>
    %4 = arith.mulf %1, %1 : vector<16x8xf32>
    %cst = arith.constant dense<0.000000e+00> : vector<16xf32>
    %5 = vector.multi_reduction <add>, %4, %cst [1] : vector<16x8xf32> to vector<16xf32>
    %6 = vector.shape_cast %5 : vector<16xf32> to vector<16x1xf32>
    %cst_5 = arith.constant -0.222222224 : f32
    %7 = vector.broadcast %cst_5 : f32 to vector<16x1xf32>
    %8 = arith.mulf %7, %6 : vector<16x1xf32>
    %9 = arith.mulf %3, %3 : vector<8x128xf32>
    %cst_6 = arith.constant dense<0.000000e+00> : vector<128xf32>
    %10 = vector.multi_reduction <add>, %9, %cst_6 [0] : vector<8x128xf32> to vector<128xf32>
    %11 = vector.shape_cast %10 : vector<128xf32> to vector<1x128xf32>
    %cst_7 = arith.constant -0.222222224 : f32
    %12 = vector.broadcast %cst_7 : f32 to vector<1x128xf32>
    %13 = arith.mulf %12, %11 : vector<1x128xf32>
    %cst_8 = arith.constant -0.223143548 : f32
    %14 = vector.broadcast %cst_8 : f32 to vector<1x128xf32>
    %15 = arith.addf %13, %14 : vector<1x128xf32>
    %cst_9 = arith.constant dense<0.000000e+00> : vector<16x128xf32>
    %16 = tpu.matmul %1, %3, %cst_9 {dimension_numbers = #tpu.dot_dimension_numbers<[1], [0], [0], [1], [0, 0, 1, 1], [], []>} : vector<16x8xf32>, vector<8x128xf32>, vector<16x128xf32> -> vector<16x128xf32>
    %17 = vector.broadcast %8 : vector<16x1xf32> to vector<16x128xf32>
    %18 = vector.broadcast %15 : vector<1x128xf32> to vector<16x128xf32>
    %19 = arith.addf %17, %18 : vector<16x128xf32>
    %cst_10 = arith.constant 0.444444448 : f32
    %20 = vector.broadcast %cst_10 : f32 to vector<16x128xf32>
    %21 = arith.mulf %20, %16 : vector<16x128xf32>
    %22 = arith.addf %19, %21 : vector<16x128xf32>
    %cst_11 = arith.constant -0.223143548 : f32
    %23 = vector.broadcast %cst_11 : f32 to vector<16x128xf32>
    %24 = arith.minimumf %22, %23 : vector<16x128xf32>
    %25 = math.exp %24 : vector<16x128xf32>
    %c0_12 = arith.constant 0 : index
    %c0_13 = arith.constant 0 : index
    %c0_14 = arith.constant 0 : index
    %26 = vector.load %arg6[%c0_12, %c0_13, %c0_14] : memref<1x16x128xf32, #tpu.memory_space<vmem>>, vector<1x16x128xf32>
    %27 = vector.shape_cast %26 : vector<1x16x128xf32> to vector<16x128xf32>
    %28 = vector.shape_cast %25 : vector<16x128xf32> to vector<1x16x128xf32>
    tpu.vector_store %arg6[%c0_12, %c0_13, %c0_14], %28 {strides = array<i32>} : memref<1x16x128xf32, #tpu.memory_space<vmem>>, vector<1x16x128xf32>,
    %c0_i32 = arith.constant 0 : i32
    %29 = arith.cmpi eq, %arg2, %c0_i32 : i32
    %30 = arith.extui %29 : i1 to i32
    %c0_i32_15 = arith.constant 0 : i32
    %31 = arith.cmpi ne, %30, %c0_i32_15 : i32
    scf.if %31 {
      %cst_25 = arith.constant 0.000000e+00 : f32
      %44 = vector.broadcast %cst_25 : f32 to vector<1x16x128xf32>
      %c0_26 = arith.constant 0 : index
      %c0_27 = arith.constant 0 : index
      %c0_28 = arith.constant 0 : index
      %45 = vector.load %arg7[%c0_26, %c0_27, %c0_28] : memref<1x16x128xf32, #tpu.memory_space<vmem>>, vector<1x16x128xf32>
      tpu.vector_store %arg7[%c0_26, %c0_27, %c0_28], %44 {strides = array<i32>} : memref<1x16x128xf32, #tpu.memory_space<vmem>>, vector<1x16x128xf32>,
    } else {
    }
    %c128_i32 = arith.constant 128 : i32
    %32 = arith.muli %arg2, %c128_i32 : i32
    %33 = tpu.assume_multiple %32, 128 : i32
    %c0_16 = arith.constant 0 : index
    %34 = arith.index_cast %33 : i32 to index
    %c0_17 = arith.constant 0 : index
    %35 = vector.load %arg5[%c0_16, %34, %c0_17] : memref<1x128x128xf32, #tpu.memory_space<vmem>>, vector<1x128x128xf32>
    %36 = vector.shape_cast %35 : vector<1x128x128xf32> to vector<128x128xf32>
    %c0_18 = arith.constant 0 : index
    %c0_19 = arith.constant 0 : index
    %c0_20 = arith.constant 0 : index
    %37 = vector.load %arg7[%c0_18, %c0_19, %c0_20] : memref<1x16x128xf32, #tpu.memory_space<vmem>>, vector<1x16x128xf32>
    %38 = vector.shape_cast %37 : vector<1x16x128xf32> to vector<16x128xf32>
    %cst_21 = arith.constant dense<0.000000e+00> : vector<16x128xf32>
    %39 = tpu.matmul %25, %36, %cst_21 {dimension_numbers = #tpu.dot_dimension_numbers<[1], [0], [0], [1], [0, 0, 1, 1], [], []>} : vector<16x128xf32>, vector<128x128xf32>, vector<16x128xf32> -> vector<16x128xf32>
    %40 = arith.addf %38, %39 : vector<16x128xf32>
    %c0_22 = arith.constant 0 : index
    %c0_23 = arith.constant 0 : index
    %c0_24 = arith.constant 0 : index
    %41 = vector.load %arg7[%c0_22, %c0_23, %c0_24] : memref<1x16x128xf32, #tpu.memory_space<vmem>>, vector<1x16x128xf32>
    %42 = vector.shape_cast %41 : vector<1x16x128xf32> to vector<16x128xf32>
    %43 = vector.shape_cast %40 : vector<16x128xf32> to vector<1x16x128xf32>
    tpu.vector_store %arg7[%c0_22, %c0_23, %c0_24], %43 {strides = array<i32>} : memref<1x16x128xf32, #tpu.memory_space<vmem>>, vector<1x16x128xf32>,
    return
  }
  func.func @transform_0(%arg0: i32, %arg1: i32, %arg2: i32) -> (i32, i32, i32) {
    %c0_i32 = arith.constant 0 : i32
    %c0_i32_0 = arith.constant 0 : i32
    return %arg0, %arg1, %c0_i32 : i32, i32, i32
  }
  func.func @transform_1(%arg0: i32, %arg1: i32, %arg2: i32) -> (i32, i32, i32) {
    %c0_i32 = arith.constant 0 : i32
    %c0_i32_0 = arith.constant 0 : i32
    return %arg0, %c0_i32, %arg2 : i32, i32, i32
  }
  func.func @transform_2(%arg0: i32, %arg1: i32, %arg2: i32) -> (i32, i32, i32) {
    %c0_i32 = arith.constant 0 : i32
    %c0_i32_0 = arith.constant 0 : i32
    %c0_i32_1 = arith.constant 0 : i32
    return %arg0, %c0_i32, %c0_i32_0 : i32, i32, i32
  }
  func.func @transform_3(%arg0: i32, %arg1: i32, %arg2: i32) -> (i32, i32, i32) {
    %c0_i32 = arith.constant 0 : i32
    return %arg0, %arg1, %arg2 : i32, i32, i32
  }
  func.func @transform_4(%arg0: i32, %arg1: i32, %arg2: i32) -> (i32, i32, i32) {
    %c0_i32 = arith.constant 0 : i32
    %c0_i32_0 = arith.constant 0 : i32
    return %arg0, %arg1, %c0_i32 : i32, i32, i32
  }
}

</mosaic_0001>

<bundles_post_ra>
// kernel: custom-call.11
= control target key start
LH: loop header
LB: loop body
LE: loop exit
PB: predicated region body
PF: predicated region fallthrough
CT: control target
= control target key end

     0   :  { %5 = vsyncpa [#allocation4], 0  ;;  %s963_s0 = inlined_call_operand.vmem [shape: f32[2,16,16], index: 0, kind: input, shape index: {}]   ;;  %s964_s1 = inlined_call_operand.vmem [shape: f32[2,16,16], index: 1, kind: output, shape index: {0}]   ;;  %s965_s2 = inlined_call_operand.hbm [shape: s32[2,16], index: 2, kind: output, shape index: {1}]   ;;  %s966_s3 = inlined_call_operand.vmem [shape: s32[2,16], index: 3, kind: output, shape index: {2}]  }
   0x1   :  { %7 = vsyncpa [#allocation4 + $0x1], 0  ;;  %s755_s12 = smov 0   ;;  %s757_s13 = smov 0  }
   0x2   :  { %s759_s14 = smov 0   ;;  %s761_s15 = smov 0  }
   0x3 LB: > { %s776_s16 = sadd.s32 4294967295, %s723_s15   ;;  %s565_s17 = sadd.s32 4294967294, %s723_s15   ;;  %s723_s15 = sphi %s761_s15, %s974_s15   ;;  %s719_s14 = sphi %s759_s14, %s973_s14   ;;  %s715_s13 = sphi %s757_s13, %s972_s13   ;;  %s711_s12 = sphi %s755_s12, %s971_s12  }
   0x4   : > { %s780_s18 = sadd.s32 1, %s723_s15   ;;  %s17_s19 = sshrl.u32 %s723_s15, 3 }
   0x5   : > { %s18_s20 = sshrl.u32 %s780_s18, 3  ;;  %s22_s21 = sadd.s32 1, %s719_s14 }
   0x6   : > { %s19_s22 = ssub.s32 %s17_s19, %s18_s20  ;;  %p32_p0 = scmp.ne.s32.totalorder %s719_s14, %s715_s13 }
   0x7   : > { %p20_p1 = scmp.eq.s32.totalorder %s19_s22, 0  ;;  %p33_p2 = scmp.eq.s32.totalorder %s776_s16, 1 }
   0x8   : > { %p38_p3 = scmp.ne.s32.totalorder %s715_s13, %s711_s12  ;;  %p39_p4 = scmp.eq.s32.totalorder %s565_s17, 1 }
   0x9   : > { %s791_s23 = scalar_select %p20_p1, %s719_s14, %s22_s21  }
   0xa   : > { %p793_p5 = por %p33_p2, %p32_p0  ;;  %p797_p6 = por %p39_p4, %p38_p3 }
   0xb   : > { %p567_p7 = scmp.ge.s32.totalorder %s723_s15, 2 }
   0xc   : > { %s85_s26 = sand.u32 (!%p567_p7), 1, %s723_s15   ;;  %s569_s27 = sshll.u32 (!%p567_p7), %s723_s15, 4 }
   0xd   : > { %83 = sbr.rel (%p567_p7) target bundleno = 20 (0x14), region = 16  ;;  %s568_s28 = sshll.u32 (!%p567_p7), %s85_s26, 4 }
   0xe   : > { %s89_s4 = scalar_lea.vmem (!%p567_p7), %s963_s0, %s569_s27  ;;  %s87_s5 = scalar_lea.vmem (!%p567_p7), [#allocation0], %s568_s28 }
   0xf   : > { %v102_v0 = vld [vmem:[%s89_s4] sm:$0xff] (!%p567_p7)  ;;  %v104_v1 = vld [vmem:[%s89_s4 + $0x8] sm:$0xff] (!%p567_p7) }
  0x10   : > { %103 = vst [vmem:[%s87_s5] sm:$0xff] (!%p567_p7), %v102_v0  ;;  %105 = vst [vmem:[%s87_s5 + $0x8] sm:$0xff] (!%p567_p7), %v104_v1 }
  0x14 PF: > { %p570_p8 = scmp.ge.s32.totalorder %s723_s15, 1  ;;  %p110_p9 = scmp.lt.s32.totalorder %s723_s15, 3 }
  0x16   : > { %p111_p10 = pnand %p570_p8, %p110_p9 }
  0x18   : > { %114 = sbr.rel (%p111_p10) target bundleno = 450 (0x1c2), region = 39 }
  0x1f   : > { %s117_s6 = sand.u32 1, %s776_s16   ;;  %s132_s7 = sand.u32 1, %s715_s13   ;;  %v154_v2 = vlaneseq  ;;  %v733_v6 = vmov 0  }
  0x20   : > { %s571_s8 = sshll.u32 %s117_s6, 4  ;;  %s815_s9 = sshll.u32 %s132_s7, 1 }
  0x21   : > { %v818_v3 = vshrl.u32 %v154_v2, 7  ;;  %s119_s10 = scalar_lea.vmem [#allocation0], %s571_s8  ;;  %s820_s11 = scalar_lea.vmem [#allocation1], %s571_s8 }
  0x22   : > { %v143_v4 = vld [vmem:[%s119_s10] sm:$0xff]  ;;  %v575_v5 = vld [vmem:[%s119_s10 + $0x8] sm:$0xff]  ;;  %s149_s17 = sand.u32 7, %s776_s16   ;;  %s134_s20 = scalar_lea.vmem [#allocation3], %s815_s9 }
  0x23   : > { %144 = vst [vmem:[%s820_s11] sm:$0xff] %v143_v4  ;;  %576 = vst [vmem:[%s820_s11 + $0x8] sm:$0xff] %v575_v5  ;;  %s825_s19 = scalar_lea.vmem [#allocation2], %s149_s17  ;;  %s140_s21 = scalar_lea.vmem [#allocation6], %s815_s9 }
  0x24   : > { %153 = vst [vmem:[%s825_s19] sm:$0x1] %v733_v6  ;;  %s830_s22 = scalar_lea.vmem [#allocation5], %s149_s17  ;;  %s725_s26 = smov 0  }
  0x25 LB: >> { %s577_s27 = sshll.u32 %s727_s26, 3  ;;  %s162_s26 = sadd.s32 1, %s727_s26   ;;  %s727_s26 = sphi %s725_s26, %s162_s26  }
  0x26   : >> { %v166_v7 = vstv %s577_s27  ;;  %s164_s28 = scalar_lea.vmem [#allocation7], %s577_s27  ;;  %p159_p11 = scmp.ge.s32.totalorder %s162_s26, 2  }
  0x27   : >> { %v167_v8 = vadd.s32 %v166_v7, %v818_v3  ;;  %s833_s29 = smov (%p159_p11), 0  }
  0x28   : > { %161 = sbr.rel (!%p159_p11) target bundleno = 37 (0x25), region = 191 }
  0x29   : >> { %168 = vst [vmem:[%s164_s28] sm:$0xff] %v167_v8 }
  0x2f LB: >> { %v179_v9 = vld [vmem:[%s820_s11] sm:$0xff]  ;;  %v580_v10 = vld [vmem:[%s820_s11 + $0x8] sm:$0xff]  ;;  %v841_v11 = vadd.s32 8, %v818_v3  ;;  %v844_v13 = vstv %s731_s29  ;;  %s237_s30 = ssub.s32 128, %s731_s29  ;;  %v243_v46 = vand.u32 127, %v154_v2  ;;  %s249_s4 = scalar_lea.vmem %s820_s11, %s731_s29 [#allocation1]  ;;  %s731_s29 = sphi %s833_s29, %s174_s29  }
  0x30   : >> { %v180_v12 = vand.u32 2147483647, %v179_v9  ;;  %v192_v14 = vand.u32 2147483647, %v580_v10  ;;  %vm183_vm0 = vcmp.ge.s32.totalorder %v818_v3, %v844_v13  ;;  %v246_v49 = vld [vmem:[%s825_s19] ss:$0 sm:$0xff] }
  0x31   : >> { %vm195_vm3 = vcmp.ge.s32.totalorder %v841_v11, %v844_v13  ;;  %vm267_vm13 = vcmp.gt.s32.totalorder %v243_v46, %v844_v13  ;;  %vm290_vm14 = vcmp.gt.s32.totalorder %v841_v11, %v844_v13  ;;  %vm244_vm15 = vcmp.eq.s32.totalorder %v243_v46, %v844_v13  ;;  %v251_v50 = vld [vmem:[%s249_s4] ss:$0 sm:$0xff]  ;;  %s255_s6 = scalar_lea.vmem [#allocation7], %s731_s29  ;;  %s174_s29 = sadd.s32 1, %s731_s29  }
  0x32   : >> { %vm579_vm1 = vcmp.gt.f32.partialorder %v180_v12, -inf  ;;  %v257_v51 = vld [vmem:[%s255_s6] ss:$0 sm:$0xff]  ;;  %p171_p12 = scmp.ge.s32.totalorder %s174_s29, 16  }
  0x33   : >> { %vm187_vm2 = vmand %vm183_vm0, %vm579_vm1  ;;  %s400_s17 = sshrl.u32 (%p171_p12), %s776_s16, 3  ;;  %s586_s26 = sshll.u32 (%p171_p12), %s776_s16, 4 }
  0x34   : >> { %v188_v15 = vsel %vm187_vm2, %v818_v3, %v844_v13  ;;  %v189_v16 = vsel %vm187_vm2, %v180_v12, -inf  ;;  %vm864_vm0 = vmand %vm290_vm14, %vm244_vm15  ;;  %vm275_vm2 = vcmp.gt.s32.totalorder %v818_v3, %v844_v13  ;;  %s587_s27 = sshll.u32 (%p171_p12), %s400_s17, 5  ;;  %s377_s29 = scalar_lea.vmem (%p171_p12), %s964_s1, %s586_s26 }
  0x35   : >> { %vm198_vm4 = vcmp.lt.f32.partialorder %v189_v16, %v192_v14  ;;  %s734_s26 = smov (%p171_p12), [#allocation3]  }
  0x36   : >> { %vm199_vm5 = vmand %vm195_vm3, %vm198_vm4 }
  0x37   : >> { %v200_v17 = vsel %vm199_vm5, %v841_v11, %v188_v15  ;;  %v201_v18 = vsel %vm199_vm5, %v192_v14, %v189_v16  ;;  %vm279_vm4 = vmand %vm275_vm2, %vm244_vm15 }
  0x38   : >> { %v202_v19 = vrot.slane %v201_v18, 1  ;;  %v203_v20 = vrot.slane %v200_v17, 1 }
  0x3a   : >> { %vm204_vm6 = vcmp.ge.f32.partialorder %v202_v19, %v201_v18  ;;  %v207_v21 = vrot.slane %v202_v19, 1  ;;  %v208_v22 = vrot.slane %v203_v20, 1 }
  0x3b   : >> { %v205_v23 = vsel %vm204_vm6, %v202_v19, %v201_v18  ;;  %v206_v24 = vsel %vm204_vm6, %v203_v20, %v200_v17 }
  0x3c   : >> { %vm209_vm7 = vcmp.ge.f32.partialorder %v207_v21, %v205_v23  ;;  %v212_v25 = vrot.slane %v207_v21, 1  ;;  %v213_v26 = vrot.slane %v208_v22, 1 }
  0x3d   : >> { %v210_v27 = vsel %vm209_vm7, %v207_v21, %v205_v23  ;;  %v211_v28 = vsel %vm209_vm7, %v208_v22, %v206_v24 }
  0x3e   : >> { %vm214_vm8 = vcmp.ge.f32.partialorder %v212_v25, %v210_v27  ;;  %v217_v29 = vrot.slane %v212_v25, 1  ;;  %v218_v30 = vrot.slane %v213_v26, 1 }
  0x3f   : >> { %v215_v31 = vsel %vm214_vm8, %v212_v25, %v210_v27  ;;  %v216_v32 = vsel %vm214_vm8, %v213_v26, %v211_v28 }
  0x40   : >> { %vm219_vm9 = vcmp.ge.f32.partialorder %v217_v29, %v215_v31  ;;  %v222_v33 = vrot.slane %v217_v29, 1  ;;  %v223_v34 = vrot.slane %v218_v30, 1 }
  0x41   : >> { %v220_v35 = vsel %vm219_vm9, %v217_v29, %v215_v31  ;;  %v221_v36 = vsel %vm219_vm9, %v218_v30, %v216_v32 }
  0x42   : >> { %vm224_vm10 = vcmp.ge.f32.partialorder %v222_v33, %v220_v35  ;;  %v227_v37 = vrot.slane %v222_v33, 1  ;;  %v228_v38 = vrot.slane %v223_v34, 1 }
  0x43   : >> { %v225_v39 = vsel %vm224_vm10, %v222_v33, %v220_v35  ;;  %v226_v40 = vsel %vm224_vm10, %v223_v34, %v221_v36 }
  0x44   : >> { %vm229_vm11 = vcmp.ge.f32.partialorder %v227_v37, %v225_v39  ;;  %v232_v41 = vrot.slane %v227_v37, 1  ;;  %v233_v42 = vrot.slane %v228_v38, 1 }
  0x45   : >> { %v230_v43 = vsel %vm229_vm11, %v227_v37, %v225_v39  ;;  %v231_v44 = vsel %vm229_vm11, %v228_v38, %v226_v40 }
  0x46   : >> { %vm234_vm12 = vcmp.ge.f32.partialorder %v232_v41, %v230_v43 }
  0x47   : >> { %v236_v45 = vsel %vm234_vm12, %v233_v42, %v231_v44 }
  0x48   : >> { %238 = vrot.lane.b32.xlu0 %v236_v45, %s237_s30 }
  0xba   : >> { %v239_v48 = vpop.permute.xlu0 %238 }
  0xbb   : >> { %591 = vpush %v239_v48 }
  0xec   : >> { %s592_s5 = spop %591 }
  0xed   : >> { %v245_v52 = vstv %s592_s5  ;;  %s250_s8 = scalar_lea.vmem %s820_s11, %s592_s5 [#allocation1]  ;;  %s256_s10 = scalar_lea.vmem [#allocation7], %s592_s5 }
  0xee   : >> { %v247_v53 = vsel %vm244_vm15, %v245_v52, %v246_v49  ;;  %v252_v54 = vld [vmem:[%s250_s8] ss:$0 sm:$0xff]  ;;  %s910_s5 = scalar_lea.hbm (%p171_p12), %s965_s2, %s587_s27 }
  0xef   : >> { %v258_v55 = vld [vmem:[%s256_s10] ss:$0 sm:$0xff]  ;;  %248 = vst [vmem:[%s825_s19] sm:$0x1] %v247_v53  ;;  %253 = vst [vmem:[%s250_s8] sm:$0x1] %v251_v50  ;;  %vm261_vm1 = vcmp.ne.f32.partialorder %v252_v54, 0.0  ;;  %v268_v5 = vsel %vm267_vm13, %v252_v54, 0.0 }
  0xf0   : >> { %259 = vst [vmem:[%s256_s10] sm:$0x1] %v257_v51  ;;  %254 = vst [vmem:[%s249_s4] sm:$0x1] %v252_v54  ;;  %s368_s8 = scalar_lea.sflag (%p171_p12), [#allocation4], %s132_s7  ;;  %s657_s19 = sshll.u32 (%p171_p12), %s734_s26, 4  ;;  %s658_s19 = int_to_ptr.vmem [resolvable:$false] %s657_s19 }
  0xf1   : >> { %260 = vst [vmem:[%s255_s6] sm:$0x1] %v258_v55  ;;  %vm262_vm3 = vmand %vm244_vm15, %vm261_vm1  ;;  %s407_s6 = sshll.u32 (%p171_p12), %s134_s20, 4  ;;  %s408_s6 = int_to_ptr.vmem [resolvable:$true] %s407_s6 }
  0xf2   : >> { %v263_v56 = vsel %vm262_vm3, %v252_v54, 1.0  ;;  %s653_s10 = scalar_lea.vmem (%p171_p12), %s408_s6, 32  ;;  %p660_p2 = scmp.lt.s32.totalorder (%p171_p12), %s408_s6, %s658_s19 }
  0xf3   : >> { %v291_v57 = vsel %vm290_vm14, %v263_v56, 1.0  ;;  %v276_v58 = vsel %vm275_vm2, %v263_v56, 1.0  ;;  %p654_p13 = scmp.ne.s32.totalorder (%p171_p12), %s408_s6, %s653_s10 }
  0xf4   : >> { %649 = vrcp.f32 %v291_v57 }
  0xf5   : >> { %651 = vrcp.f32 %v276_v58  ;;  %p655_p0 = pnand (%p171_p12), %p654_p13, %p793_p5 }
  0xf6   : > { %v354_v14 = vld [vmem:[#allocation2] sm:$0x3] (%p171_p12) }
  0xf7   : >> { %v581_v60 = vld [vmem:[%s820_s11 + $0x8] sm:$0xff]  ;;  %v272_v63 = vld [vmem:[%s820_s11] sm:$0xff]  ;;  %356 = vst [vmem:[%s134_s20] sm:$0x3] (%p171_p12), %v354_v14  ;;  %p656_p1 = pneg (%p171_p12), %p655_p0 }
  0xf8   : > { %v301_v12 = vld [vmem:[#allocation7] sm:$0xff] (%p171_p12)  ;;  %v303_v13 = vld [vmem:[#allocation7 + $0x8] sm:$0xff] (%p171_p12) }
  0xfe   : >> { %v650_v59 = vpop.eup %649 }
  0xff   : >> { %v652_v61 = vpop.eup %651  ;;  %v293_v62 = vmul.f32 %v650_v59, %v581_v60 }
 0x100   : >> { %v278_v0 = vmul.f32 %v652_v61, %v272_v63 }
 0x101   : >> { %v295_v1 = vsel %vm864_vm0, %v293_v62, 0.0 }
 0x102   : >> { %296 = vadd.xlane.f32.xlu1 %v295_v1  ;;  %v280_v4 = vsel %vm279_vm4, %v278_v0, 0.0 }
 0x103   : >> { %281 = vadd.xlane.f32.xlu0 %v280_v4 }
 0x130   : > { %318 = vxpose.xlu0.b32.start [1/2] (short) (narrow) (%p171_p12), %v301_v12, 8 }
 0x134   : > { %319 = vxpose.xlu0.b32.end [2/2] (short) (narrow) (%p171_p12), %v303_v13, 8 }
 0x18f   : >> { %v297_v6 = vpop.xlane.xlu1 %296  ;;  %173 = sbr.rel (!%p171_p12) target bundleno = 47 (0x2f), region = 202 }
 0x190   : >> { %v298_v7 = vmul.f32 %v297_v6, %v268_v5  ;;  %v282_v8 = vpop.xlane.xlu0 %281 }
 0x191   : >> { %v283_v9 = vmul.f32 %v282_v8, %v268_v5 }
 0x192   : >> { %v299_v10 = vsub.f32 %v293_v62, %v298_v7 }
 0x193   : >> { %v284_v11 = vsub.f32 %v278_v0, %v283_v9 }
 0x194   : >> { %582 = vst [vmem:[%s820_s11 + $0x8] sm:$0xff] %v299_v10 }
 0x195   : >> { %285 = vst [vmem:[%s820_s11] sm:$0xff] %v284_v11 }
 0x19b   : > { %v392_v3 = vld [vmem:[%s820_s11 + $0x8] sm:$0xff] }
 0x19c   : > { %v390_v2 = vld [vmem:[%s820_s11] sm:$0xff]  ;;  %393 = vst [vmem:[%s377_s29 + $0x8] sm:$0xff] %v392_v3  ;;  %s659_s11 = scalar_lea.vmem %s658_s19, 64 }
 0x19d   : > { %391 = vst [vmem:[%s377_s29] sm:$0xff] %v390_v2  ;;  %p661_p3 = scmp.lt.s32.totalorder %s659_s11, %s653_s10 }
 0x19f   : > { %p662_p4 = por %p661_p3, %p660_p2 }
 0x1a1   : > { %p663_p8 = pnand %p662_p4, %p656_p1 }
 0x1a3   : > { %666 = shalt.err (!%p663_p8)
}
 0x1a4   : > { %s667_s7 = scalar_lea.hbm %s910_s5, 32  ;;  %s671_s28 = scalar_lea.hbm %s965_s2, 32 }
 0x1a5   : > { %p668_p9 = scmp.ne.s32.totalorder %s910_s5, %s667_s7  ;;  %p672_p12 = scmp.lt.u32.totalorder %s910_s5, %s965_s2 }
 0x1a6   : > { %p673_p13 = scmp.lt.u32.totalorder %s671_s28, %s667_s7  ;;  %p675_p1 = scmp.lt.u32.totalorder %s667_s7, %s910_s5 }
 0x1a7   : > { %p669_p10 = pnand %p668_p9, %p793_p5 }
 0x1a8   : > { %p674_p0 = por %p673_p13, %p672_p12 }
 0x1a9   : > { %p670_p11 = pneg %p669_p10 }
 0x1aa   : > { %p676_p2 = por %p675_p1, %p674_p0 }
 0x1ac   : > { %p677_p3 = pnand %p676_p2, %p670_p11 }
 0x1ae   : > { %680 = shalt.err (!%p677_p3)
}
 0x1af   : > { %593 = dma.vmem_to_hbm [thread:$0]  (%p793_p5), %s408_s6, 32, %s910_s5, %s368_s8  }
 0x1b0   : > { %v334_v15 = vpop.trf.xlu0  ;;  %s588_s4 = sshll.u32 (%p793_p5), %s400_s17, 1 }
 0x1b1   : > { %350 = vst [vmem:[%s830_s22] sm:$0x1] %v334_v15  ;;  %s416_s19 = scalar_lea.vmem (%p793_p5), %s966_s3, %s588_s4 }
 0x1b3   : > { %413 = sbr.rel (!%p793_p5) target bundleno = 450 (0x1c2), region = 80 }
 0x1b8   : > { %v360_v16 = vld [vmem:[#allocation5] sm:$0x3] }
 0x1b9   : > { %362 = vst [vmem:[%s140_s21] sm:$0x3] %v360_v16 }
 0x1c0   : > { %v432_v17 = vld [vmem:[%s140_s21] sm:$0x3] }
 0x1c1   : > { %433 = vst [vmem:[%s416_s19] sm:$0x3] %v432_v17 }
 0x1c2 PF: > { %s460_s22 = sand.u32 1, %s711_s12   ;;  %p596_p5 = pnand %p567_p7, %p797_p6 }
 0x1c3   : > { %s461_s24 = scalar_lea.sflag [#allocation4], %s460_s22 }
 0x1c4   : > { %706 = dma.done.wait (!%p596_p5), %s461_s24, 32  }
 0x1c5   : > { %708 = vsyncadd (!%p596_p5), %s461_s24, 4294967264  ;;  %p10_p4 = scmp.ge.s32.totalorder %s780_s18, 4   ;;  %s971_s12 = smov %s715_s13 }
 0x1c6   : > { %s972_s13 = smov %s719_s14  ;;  %s973_s14 = smov %s791_s23 }
 0x1c7   : > { %s974_s15 = smov %s780_s18  ;;  %12 = sbr.rel (!%p10_p4) target bundleno = 3 (0x3), region = 213 }
 0x1ce   :  { %473 = vsyncpa [#allocation4], 1 }
 0x1cf   :  { %475 = vsyncpa [#allocation4 + $0x1], 1 }

// kernel: custom-call.13
= control target key start
LH: loop header
LB: loop body
LE: loop exit
PB: predicated region body
PF: predicated region fallthrough
CT: control target
= control target key end

     0   :  { %s552_s6 = smov 0   ;;  %s554_s7 = smov 0   ;;  %s641_s0 = inlined_call_operand.vmem [shape: f32[2,1,16,16], index: 0, kind: input, shape index: {}]   ;;  %s642_s1 = inlined_call_operand.vmem [shape: f32[2,1,16,16], index: 1, kind: output, shape index: {}]  }
   0x1   :  { %s556_s8 = smov 0  }
   0x2 LB: > { %s468_s9 = sadd.s32 4294967295, %s538_s8   ;;  %s33_s10 = sadd.s32 1, %s534_s7  ;;  %s538_s8 = sphi %s556_s8, %s7_s8   ;;  %s534_s7 = sphi %s554_s7, %s644_s7   ;;  %s530_s6 = sphi %s552_s6, %s643_s6  }
   0x3   : > { %p35_p0 = scmp.ge.s32.totalorder %s33_s10, 2  ;;  %p470_p1 = scmp.ge.s32.totalorder %s538_s8, 2 }
   0x4   : > { %s49_s11 = sand.u32 (!%p470_p1), 1, %s538_s8   ;;  %s484_s12 = sshll.u32 (!%p470_p1), %s534_s7, 4 }
   0x5   : > { %s646_s10 = smov (%p35_p0, %s33_s10), 0  ;;  %47 = sbr.rel (%p470_p1) target bundleno = 12 (0xc), region = 16 }
   0x6   : > { %s471_s13 = sshll.u32 (!%p470_p1), %s49_s11, 4  ;;  %s58_s16 = scalar_lea.vmem (!%p470_p1), %s641_s0, %s484_s12 }
   0x7   : > { %v88_v0 = vld [vmem:[%s58_s16] sm:$0xff] (!%p470_p1)  ;;  %v90_v1 = vld [vmem:[%s58_s16 + $0x8] sm:$0xff] (!%p470_p1)  ;;  %s51_s17 = scalar_lea.vmem (!%p470_p1), [#allocation0], %s471_s13 }
   0x8   : > { %89 = vst [vmem:[%s51_s17] sm:$0xff] (!%p470_p1), %v88_v0  ;;  %91 = vst [vmem:[%s51_s17 + $0x8] sm:$0xff] (!%p470_p1), %v90_v1 }
   0xc PF: > { %p474_p2 = scmp.ge.s32.totalorder %s538_s8, 1  ;;  %p96_p3 = scmp.lt.s32.totalorder %s538_s8, 3 }
   0xe   : > { %p97_p4 = pnand %p474_p2, %p96_p3 }
  0x10   : > { %100 = sbr.rel (%p97_p4) target bundleno = 2373 (0x945), region = 54 }
  0x17   : > { %s103_s18 = sand.u32 1, %s468_s9   ;;  %v114_v2 = vlaneseq  ;;  %v540_v11 = vmov -1.0   ;;  %v541_v55 = vmov 0.0   ;;  %s485_s21 = sshll.u32 %s530_s6, 4 }
  0x18   : > { %s475_s19 = sshll.u32 %s103_s18, 4  ;;  %s368_s24 = scalar_lea.vmem %s642_s1, %s485_s21 }
  0x19   : > { %v579_v3 = vand.u32 127, %v114_v2  ;;  %v118_v4 = vshrl.u32 %v114_v2, 7  ;;  %s581_s20 = scalar_lea.vmem [#allocation0], %s475_s19 }
  0x1a   : > { %v121_v5 = vld [vmem:[%s581_s20] sm:$0xff]  ;;  %v477_v38 = vld [vmem:[%s581_s20 + $0x8] sm:$0xff] }
  0x1b   : > { %vm120_vm0 = vcmp.eq.s32.totalorder %v118_v4, %v579_v3  ;;  %vm116_vm1 = vcmp.lt.s32.totalorder %v579_v3, 16  ;;  %vm125_vm2 = vcmp.ge.s32.totalorder %v118_v4, %v579_v3  ;;  %vm155_vm4 = vcmp.eq.s32.totalorder %v579_v3, 0 }
  0x1c   : > { %v122_v6 = vsel %vm120_vm0, %v121_v5, 0.0  ;;  %vm126_vm3 = vmand %vm125_vm2, %vm116_vm1  ;;  %vm152_vm5 = vcmp.eq.s32.totalorder %v579_v3, %v118_v4  ;;  %v156_v12 = vsel %vm155_vm4, 1.0, %v540_v11  ;;  %vm170_vm6 = vcmp.eq.s32.totalorder %v579_v3, 1 }
  0x1d   : > { %123 = vadd.xlane.f32.xlu0 %v122_v6  ;;  %v127_v8 = vsel %vm126_vm3, %v121_v5, 0.0  ;;  %v157_v13 = vsel %vm152_vm5, %v156_v12, 0.0  ;;  %vm180_vm7 = vcmp.eq.s32.totalorder %v579_v3, 2  ;;  %vm190_vm8 = vcmp.eq.s32.totalorder %v579_v3, 3 }
  0x1e   : > { %vm200_vm9 = vcmp.eq.s32.totalorder %v579_v3, 4  ;;  %v135_v33 = vadd.s32 8, %v118_v4  ;;  %vm210_vm11 = vcmp.eq.s32.totalorder %v579_v3, 5  ;;  %vm220_vm14 = vcmp.eq.s32.totalorder %v579_v3, 6 }
  0x1f   : > { %vm230_vm0 = vcmp.eq.s32.totalorder %v579_v3, 7  ;;  %vm254_vm2 = vcmp.eq.s32.totalorder %v579_v3, 9  ;;  %vm268_vm3 = vcmp.eq.s32.totalorder %v579_v3, 10  ;;  %vm282_vm4 = vcmp.eq.s32.totalorder %v579_v3, 11 }
  0x20   : > { %vm136_vm10 = vcmp.eq.s32.totalorder %v135_v33, %v579_v3  ;;  %vm141_vm12 = vcmp.ge.s32.totalorder %v135_v33, %v579_v3  ;;  %vm163_vm15 = vcmp.eq.s32.totalorder %v579_v3, %v135_v33  ;;  %vm296_vm5 = vcmp.eq.s32.totalorder %v579_v3, 12 }
  0x21   : > { %v138_v39 = vsel %vm136_vm10, %v477_v38, 0.0  ;;  %vm142_vm13 = vmand %vm141_vm12, %vm116_vm1  ;;  %v164_v56 = vsel %vm163_vm15, -1.0, %v541_v55  ;;  %vm240_vm1 = vcmp.eq.s32.totalorder %v579_v3, 8 }
  0x22   : > { %v143_v46 = vsel %vm142_vm13, %v477_v38, 0.0 }
  0xaa   : > { %v585_v7 = vpop.xlane.xlu0 %123 }
  0xab   : > { %512 = vrcp.f32 %v585_v7  ;;  %vm349_vm10 = vweird.f32 %v585_v7 }
  0xb5   : > { %v592_v9 = vpop.eup %512 }
  0xb6   : > { %v129_v10 = vmul.f32 %v592_v9, %v127_v8 }
  0xb8   : > { %130 = vst [vmem:[#allocation2] sm:$0xff] %v129_v10 }
  0xbf   : > { %v166_v14 = vld [vmem:[#allocation2 + $0x1] ss:$0 sm:$0xff]  ;;  %v176_v17 = vld [vmem:[#allocation2 + $0x2] ss:$0 sm:$0xff]  ;;  %v186_v22 = vld [vmem:[#allocation2 + $0x3] ss:$0 sm:$0xff] }
  0xc0   : > { %v167_v15 = vxor.u32 2147483648, %v166_v14  ;;  %v177_v19 = vxor.u32 2147483648, %v176_v17  ;;  %v187_v24 = vxor.u32 2147483648, %v186_v22  ;;  %v196_v27 = vld [vmem:[#allocation2 + $0x4] ss:$0 sm:$0xff] }
  0xc1   : > { %v197_v29 = vxor.u32 2147483648, %v196_v27  ;;  %v206_v32 = vld [vmem:[#allocation2 + $0x5] ss:$0 sm:$0xff]  ;;  %v216_v40 = vld [vmem:[#allocation2 + $0x6] ss:$0 sm:$0xff] }
  0xc2   : > { %v171_v16 = vmul.f32 %v167_v15, %v157_v13  ;;  %v207_v35 = vxor.u32 2147483648, %v206_v32  ;;  %v217_v42 = vxor.u32 2147483648, %v216_v40  ;;  %v226_v49 = vld [vmem:[#allocation2 + $0x7] ss:$0 sm:$0xff] }
  0xc3   : > { %v227_v52 = vxor.u32 2147483648, %v226_v49 }
  0xc4   : > { %172 = vadd.xlane.f32.xlu0 %v171_v16 }
 0x151   : > { %v173_v18 = vpop.xlane.xlu0 %172 }
 0x152   : > { %v174_v20 = vsel %vm170_vm6, %v173_v18, %v157_v13  ;;  %vm310_vm6 = vcmp.eq.s32.totalorder %v579_v3, 13 }
 0x153   : > { %v181_v21 = vmul.f32 %v177_v19, %v174_v20 }
 0x155   : > { %182 = vadd.xlane.f32.xlu1 %v181_v21 }
 0x1e2   : > { %v183_v23 = vpop.xlane.xlu1 %182 }
 0x1e3   : > { %v184_v25 = vsel %vm180_vm7, %v183_v23, %v174_v20  ;;  %vm324_vm7 = vcmp.eq.s32.totalorder %v579_v3, 14 }
 0x1e4   : > { %v191_v26 = vmul.f32 %v187_v24, %v184_v25 }
 0x1e6   : > { %192 = vadd.xlane.f32.xlu1 %v191_v26 }
 0x273   : > { %v193_v28 = vpop.xlane.xlu1 %192 }
 0x274   : > { %v194_v30 = vsel %vm190_vm8, %v193_v28, %v184_v25  ;;  %vm338_vm8 = vcmp.eq.s32.totalorder %v579_v3, 15 }
 0x275   : > { %v201_v31 = vmul.f32 %v197_v29, %v194_v30 }
 0x277   : > { %202 = vadd.xlane.f32.xlu0 %v201_v31 }
 0x304   : > { %v203_v34 = vpop.xlane.xlu0 %202 }
 0x305   : > { %v204_v36 = vsel %vm200_vm9, %v203_v34, %v194_v30 }
 0x306   : > { %v211_v37 = vmul.f32 %v207_v35, %v204_v36 }
 0x308   : > { %212 = vadd.xlane.f32.xlu1 %v211_v37 }
 0x30c   : > { %139 = vadd.xlane.f32.xlu1 %v138_v39 }
 0x395   : > { %v213_v41 = vpop.xlane.xlu1 %212 }
 0x396   : > { %v214_v43 = vsel %vm210_vm11, %v213_v41, %v204_v36 }
 0x397   : > { %v221_v44 = vmul.f32 %v217_v42, %v214_v43 }
 0x399   : > { %222 = vadd.xlane.f32.xlu0 %v221_v44  ;;  %v604_v45 = vpop.xlane.xlu1 %139 }
 0x39a   : > { %514 = vrcp.f32 %v604_v45  ;;  %vm354_vm9 = vweird.f32 %v604_v45 }
 0x3a4   : > { %v610_v47 = vpop.eup %514 }
 0x3a5   : > { %v145_v48 = vmul.f32 %v610_v47, %v143_v46 }
 0x3a7   : > { %146 = vst [vmem:[#allocation2 + $0x8] sm:$0xff] %v145_v48 }
 0x3ae   : > { %v236_v50 = vld [vmem:[#allocation2 + $0x8] ss:$0 sm:$0xff]  ;;  %v250_v61 = vld [vmem:[#allocation2 + $0x9] ss:$0 sm:$0xff]  ;;  %v264_v6 = vld [vmem:[#allocation2 + $0xa] ss:$0 sm:$0xff] }
 0x3af   : > { %v237_v53 = vxor.u32 2147483648, %v236_v50  ;;  %v251_v0 = vxor.u32 2147483648, %v250_v61  ;;  %v265_v11 = vxor.u32 2147483648, %v264_v6  ;;  %v278_v16 = vld [vmem:[#allocation2 + $0xb] ss:$0 sm:$0xff] }
 0x3b0   : > { %v279_v19 = vxor.u32 2147483648, %v278_v16  ;;  %v292_v24 = vld [vmem:[#allocation2 + $0xc] ss:$0 sm:$0xff]  ;;  %v306_v32 = vld [vmem:[#allocation2 + $0xd] ss:$0 sm:$0xff] }
 0x3b1   : > { %v245_v58 = vmul.f32 %v237_v53, %v164_v56  ;;  %v293_v27 = vxor.u32 2147483648, %v292_v24  ;;  %v307_v35 = vxor.u32 2147483648, %v306_v32  ;;  %v320_v40 = vld [vmem:[#allocation2 + $0xe] ss:$0 sm:$0xff]  ;;  %v334_v50 = vld [vmem:[#allocation2 + $0xf] ss:$0 sm:$0xff] }
 0x426   : > { %v223_v51 = vpop.xlane.xlu0 %222 }
 0x427   : > { %v224_v54 = vsel %vm220_vm14, %v223_v51, %v214_v43  ;;  %v321_v43 = vxor.u32 2147483648, %v320_v40 }
 0x428   : > { %v231_v57 = vmul.f32 %v227_v52, %v224_v54 }
 0x42a   : > { %232 = vadd.xlane.f32.xlu0 %v231_v57 }
 0x42e   : > { %246 = vadd.xlane.f32.xlu0 %v245_v58 }
 0x4b7   : > { %v233_v59 = vpop.xlane.xlu0 %232 }
 0x4b8   : > { %v234_v60 = vsel %vm230_vm0, %v233_v59, %v224_v54 }
 0x4b9   : > { %v241_v62 = vmul.f32 %v237_v53, %v234_v60  ;;  %v335_v53 = vxor.u32 2147483648, %v334_v50 }
 0x4bb   : > { %v247_v63 = vpop.xlane.xlu0 %246  ;;  %242 = vadd.xlane.f32.xlu1 %v241_v62 }
 0x4bc   : > { %v248_v1 = vsel %vm240_vm1, %v247_v63, %v164_v56 }
 0x4bd   : > { %v259_v2 = vmul.f32 %v251_v0, %v248_v1 }
 0x4bf   : > { %260 = vadd.xlane.f32.xlu0 %v259_v2 }
 0x548   : > { %v243_v4 = vpop.xlane.xlu1 %242 }
 0x549   : > { %v244_v5 = vsel %vm240_vm1, %v243_v4, %v234_v60 }
 0x54a   : > { %v255_v8 = vmul.f32 %v251_v0, %v244_v5 }
 0x54c   : > { %v261_v10 = vpop.xlane.xlu0 %260  ;;  %256 = vadd.xlane.f32.xlu1 %v255_v8 }
 0x54d   : > { %v262_v12 = vsel %vm254_vm2, %v261_v10, %v248_v1 }
 0x54e   : > { %v273_v13 = vmul.f32 %v265_v11, %v262_v12 }
 0x550   : > { %274 = vadd.xlane.f32.xlu0 %v273_v13 }
 0x5d9   : > { %v257_v14 = vpop.xlane.xlu1 %256 }
 0x5da   : > { %v258_v15 = vsel %vm254_vm2, %v257_v14, %v244_v5 }
 0x5db   : > { %v269_v17 = vmul.f32 %v265_v11, %v258_v15 }
 0x5dd   : > { %v275_v18 = vpop.xlane.xlu0 %274  ;;  %270 = vadd.xlane.f32.xlu1 %v269_v17 }
 0x5de   : > { %v276_v20 = vsel %vm268_vm3, %v275_v18, %v262_v12 }
 0x5df   : > { %v287_v21 = vmul.f32 %v279_v19, %v276_v20 }
 0x5e1   : > { %288 = vadd.xlane.f32.xlu0 %v287_v21 }
 0x66a   : > { %v271_v22 = vpop.xlane.xlu1 %270 }
 0x66b   : > { %v272_v23 = vsel %vm268_vm3, %v271_v22, %v258_v15 }
 0x66c   : > { %v283_v25 = vmul.f32 %v279_v19, %v272_v23 }
 0x66e   : > { %v289_v26 = vpop.xlane.xlu0 %288  ;;  %284 = vadd.xlane.f32.xlu1 %v283_v25 }
 0x66f   : > { %v290_v28 = vsel %vm282_vm4, %v289_v26, %v276_v20 }
 0x670   : > { %v301_v29 = vmul.f32 %v293_v27, %v290_v28 }
 0x672   : > { %302 = vadd.xlane.f32.xlu0 %v301_v29 }
 0x6fb   : > { %v285_v30 = vpop.xlane.xlu1 %284 }
 0x6fc   : > { %v286_v31 = vsel %vm282_vm4, %v285_v30, %v272_v23 }
 0x6fd   : > { %v297_v33 = vmul.f32 %v293_v27, %v286_v31 }
 0x6ff   : > { %v303_v34 = vpop.xlane.xlu0 %302  ;;  %298 = vadd.xlane.f32.xlu1 %v297_v33 }
 0x700   : > { %v304_v36 = vsel %vm296_vm5, %v303_v34, %v290_v28 }
 0x701   : > { %v315_v37 = vmul.f32 %v307_v35, %v304_v36 }
 0x703   : > { %316 = vadd.xlane.f32.xlu0 %v315_v37 }
 0x78c   : > { %v299_v38 = vpop.xlane.xlu1 %298 }
 0x78d   : > { %v300_v39 = vsel %vm296_vm5, %v299_v38, %v286_v31 }
 0x78e   : > { %v311_v41 = vmul.f32 %v307_v35, %v300_v39 }
 0x790   : > { %v317_v42 = vpop.xlane.xlu0 %316  ;;  %312 = vadd.xlane.f32.xlu1 %v311_v41 }
 0x791   : > { %v318_v44 = vsel %vm310_vm6, %v317_v42, %v304_v36 }
 0x792   : > { %v329_v46 = vmul.f32 %v321_v43, %v318_v44 }
 0x794   : > { %330 = vadd.xlane.f32.xlu0 %v329_v46 }
 0x81d   : > { %v313_v48 = vpop.xlane.xlu1 %312 }
 0x81e   : > { %v314_v49 = vsel %vm310_vm6, %v313_v48, %v300_v39 }
 0x81f   : > { %v325_v51 = vmul.f32 %v321_v43, %v314_v49 }
 0x821   : > { %v331_v52 = vpop.xlane.xlu0 %330  ;;  %326 = vadd.xlane.f32.xlu1 %v325_v51 }
 0x822   : > { %v332_v54 = vsel %vm324_vm7, %v331_v52, %v318_v44 }
 0x823   : > { %v343_v55 = vmul.f32 %v335_v53, %v332_v54 }
 0x825   : > { %344 = vadd.xlane.f32.xlu0 %v343_v55 }
 0x8ae   : > { %v327_v56 = vpop.xlane.xlu1 %326 }
 0x8af   : > { %v328_v57 = vsel %vm324_vm7, %v327_v56, %v314_v49 }
 0x8b0   : > { %v339_v58 = vmul.f32 %v335_v53, %v328_v57 }
 0x8b2   : > { %v345_v59 = vpop.xlane.xlu0 %344  ;;  %340 = vadd.xlane.f32.xlu1 %v339_v58 }
 0x8b3   : > { %v346_v60 = vsel %vm338_vm8, %v345_v59, %v332_v54 }
 0x8b4   : > { %v353_v61 = vmul.f32 %v610_v47, %v346_v60 }
 0x8b6   : > { %v355_v62 = vsel %vm354_vm9, %v346_v60, %v353_v61 }
 0x8b7   : > { %401 = vst [vmem:[%s368_s24 + $0x8] sm:$0xff] %v355_v62 }
 0x93f   : > { %v341_v63 = vpop.xlane.xlu1 %340 }
 0x940   : > { %v342_v0 = vsel %vm338_vm8, %v341_v63, %v328_v57 }
 0x941   : > { %v348_v1 = vmul.f32 %v592_v9, %v342_v0 }
 0x943   : > { %v350_v3 = vsel %vm349_vm10, %v342_v0, %v348_v1 }
 0x944   : > { %399 = vst [vmem:[%s368_s24] sm:$0xff] %v350_v3 }
 0x945 PF: > { %s7_s8 = sadd.s32 1, %s538_s8   ;;  %s643_s6 = smov %s534_s7 }
 0x946   : > { %p4_p5 = scmp.ge.s32.totalorder %s7_s8, 4   ;;  %s644_s7 = smov %s646_s10 }
 0x948   :  { %6 = sbr.rel (!%p4_p5) target bundleno = 2 (0x2), region = 136 }

// kernel: posteriors.2
= control target key start
LH: loop header
LB: loop body
LE: loop exit
PB: predicated region body
PF: predicated region fallthrough
CT: control target
= control target key end

     0   :  { %s550_s9 = smov 0   ;;  %s552_s10 = smov 0   ;;  %s594_s0 = inlined_call_operand.vmem [shape: f32[2,16,8], index: 0, kind: input, shape index: {}]   ;;  %s595_s1 = inlined_call_operand.vmem [shape: f32[2,8,128], index: 1, kind: input, shape index: {}]   ;;  %s596_s2 = inlined_call_operand.vmem [shape: f32[2,16,128], index: 2, kind: output, shape index: {}]  }
   0x1   :  { %s554_s11 = smov 0  }
   0x2 LB: > { %s31_s12 = sadd.s32 1, %s529_s10  ;;  %p463_p0 = scmp.ge.s32.totalorder %s533_s11, 1  ;;  %s533_s11 = sphi %s554_s11, %s12_s11   ;;  %s529_s10 = sphi %s552_s10, %s598_s10   ;;  %s525_s9 = sphi %s550_s9, %s597_s9  }
   0x3   : > { %p33_p1 = scmp.ge.s32.totalorder %s31_s12, 2  ;;  %p156_p2 = scmp.lt.s32.totalorder %s533_s11, 3 }
   0x5   : > { %s600_s12 = smov (%p33_p1, %s31_s12), 0  ;;  %p157_p3 = pnand %p463_p0, %p156_p2 }
   0x6   : > { %p197_p4 = scmp.lt.s32.totalorder (!%p157_p3), %s525_s9, 1  ;;  %vm231_vm0 = vcmask (!%p157_p3), 64512  }
   0x7   : > { %160 = sbr.rel (%p157_p3) target bundleno = 253 (0xfd), region = 28 }
   0xe   : > { %s602_s9 = smov (!%p197_p4, %s525_s9), 1 }
   0xf   : > { %s466_s13 = sshll.u32 %s602_s9, 3  ;;  %s473_s14 = sshll.u32 %s602_s9, 4 }
  0x10   : > { %s212_s17 = scalar_lea.vmem %s595_s1, %s466_s13  ;;  %s204_s20 = scalar_lea.vmem %s594_s0, %s473_s14 }
  0x11   : > { %v228_v0 = vld [vmem:[%s212_s17] sm:$0xff]  ;;  %v227_v2 = vld [vmem:[%s204_s20 + $0x8] sm:$0xff]  ;;  %s224_s23 = scalar_lea.vmem %s596_s2, %s473_s14 }
  0x12   : > { %v226_v1 = vld [vmem:[%s204_s20] sm:$0xff]  ;;  %478 = vmatprep.subr.mxu0 %v228_v0  ;;  %v230_v4 = vmul.f32 %v227_v2, %v227_v2  ;;  %v240_v7 = vmul.f32 %v228_v0, %v228_v0 }
  0x13   : > { %v229_v3 = vmul.f32 %v226_v1, %v226_v1  ;;  %480 = vmatprep.mubr.msk.f32.mxu0 %vm231_vm0, %v226_v1  ;;  %479 = vmatpush3.msra.mxu0 %v228_v0 }
  0x14   : > { %481 = vmatmul.mubr.msk.f32.vlgmr.msra.gmra.mrb[0].mxu0 %vm231_vm0, %v227_v2  ;;  %v235_v6 = vsel %vm231_vm0, %v230_v4, 0.0  ;;  %v241_v8 = vrot.slane %v240_v7, 4 }
  0x15   : > { %v232_v5 = vsel %vm231_vm0, %v229_v3, 0.0 }
  0x16   : > { %233 = vadd.xlane.f32.xlu0 %v232_v5  ;;  %v242_v9 = vadd.f32 %v241_v8, %v240_v7 }
  0x18   : > { %v243_v10 = vrot.slane %v242_v9, 2 }
  0x1a   : > { %236 = vadd.xlane.f32.xlu0 %v235_v6  ;;  %v244_v11 = vadd.f32 %v243_v10, %v242_v9 }
  0x1c   : > { %v245_v12 = vrot.slane %v244_v11, 1 }
  0x1e   : > { %v246_v14 = vadd.f32 %v245_v12, %v244_v11 }
  0x20   : > { %v247_v16 = vmul.f32 -0.22222222, %v246_v14 }
  0x22   : > { %v248_v18 = vadd.f32 -0.22314355, %v247_v16 }
  0xa3   : > { %v234_v13 = vpop.xlane.xlu0 %233 }
  0xa4   : > { %v238_v19 = vmul.f32 -0.22222222, %v234_v13 }
  0xa6   : > { %v330_v24 = vadd.f32 %v248_v18, %v238_v19 }
  0xa7   : > { %v237_v15 = vpop.xlane.xlu0 %236 }
  0xa8   : > { %v239_v17 = vmul.f32 -0.22222222, %v237_v15 }
  0xaa   : > { %v331_v20 = vadd.f32 %v248_v18, %v239_v17 }
  0xe7   : > { %v482_v21 = vpop.f32.mrb[0].mxu0 }
  0xe8   : > { %v333_v22 = vmul.f32 0.44444445, %v482_v21  ;;  %v321_v23 = vpop.f32.mrb[1].mxu0 }
  0xe9   : > { %v332_v25 = vmul.f32 0.44444445, %v321_v23 }
  0xea   : > { %v335_v26 = vadd.f32 %v333_v22, %v331_v20 }
  0xeb   : > { %v334_v27 = vadd.f32 %v332_v25, %v330_v24 }
  0xec   : > { %v337_v28 = vmin.f32 %v335_v26, -0.22314355 }
  0xed   : > { %v336_v29 = vmin.f32 %v334_v27, -0.22314355 }
  0xee   : > { %v340_v30 = vmul.f32 1.442695, %v337_v28 }
  0xef   : > { %v338_v31 = vmul.f32 1.442695, %v336_v29 }
  0xf0   : > { %507 = vpow2.f32 %v340_v30 }
  0xf1   : > { %509 = vpow2.f32 %v338_v31 }
  0xfa   : > { %v508_v32 = vpop.eup %507 }
  0xfb   : > { %v510_v33 = vpop.eup %509  ;;  %343 = vst [vmem:[%s224_s23 + $0x8] sm:$0xff] %v508_v32 }
  0xfc   : > { %342 = vst [vmem:[%s224_s23] sm:$0xff] %v510_v33 }
  0xfd PF: > { %s12_s11 = sadd.s32 1, %s533_s11   ;;  %s597_s9 = smov %s529_s10 }
  0xfe   : > { %p9_p5 = scmp.ge.s32.totalorder %s12_s11, 4   ;;  %s598_s10 = smov %s600_s12 }
 0x100   :  { %11 = sbr.rel (!%p9_p5) target bundleno = 2 (0x2), region = 61 }

// kernel: custom-call.12
= control target key start
LH: loop header
LB: loop body
LE: loop exit
PB: predicated region body
PF: predicated region fallthrough
CT: control target
= control target key end

     0   :  { %s551_s6 = smov 0   ;;  %s553_s7 = smov 0   ;;  %s674_s0 = inlined_call_operand.vmem [shape: f32[2,1,16,16], index: 0, kind: input, shape index: {}]   ;;  %s675_s1 = inlined_call_operand.vmem [shape: f32[2,1,16,16], index: 1, kind: output, shape index: {}]  }
   0x1   :  { %s555_s8 = smov 0  }
   0x2 LB: > { %s467_s9 = sadd.s32 4294967295, %s537_s8   ;;  %s33_s10 = sadd.s32 1, %s533_s7  ;;  %s537_s8 = sphi %s555_s8, %s7_s8   ;;  %s533_s7 = sphi %s553_s7, %s677_s7   ;;  %s529_s6 = sphi %s551_s6, %s676_s6  }
   0x3   : > { %p35_p0 = scmp.ge.s32.totalorder %s33_s10, 2  ;;  %p469_p1 = scmp.ge.s32.totalorder %s537_s8, 2 }
   0x4   : > { %s49_s11 = sand.u32 (!%p469_p1), 1, %s537_s8   ;;  %s483_s12 = sshll.u32 (!%p469_p1), %s533_s7, 4 }
   0x5   : > { %s679_s10 = smov (%p35_p0, %s33_s10), 0  ;;  %47 = sbr.rel (%p469_p1) target bundleno = 12 (0xc), region = 16 }
   0x6   : > { %s470_s13 = sshll.u32 (!%p469_p1), %s49_s11, 4  ;;  %s58_s16 = scalar_lea.vmem (!%p469_p1), %s674_s0, %s483_s12 }
   0x7   : > { %v88_v0 = vld [vmem:[%s58_s16] sm:$0xff] (!%p469_p1)  ;;  %v90_v1 = vld [vmem:[%s58_s16 + $0x8] sm:$0xff] (!%p469_p1)  ;;  %s51_s17 = scalar_lea.vmem (!%p469_p1), [#allocation0], %s470_s13 }
   0x8   : > { %89 = vst [vmem:[%s51_s17] sm:$0xff] (!%p469_p1), %v88_v0  ;;  %91 = vst [vmem:[%s51_s17 + $0x8] sm:$0xff] (!%p469_p1), %v90_v1 }
   0xc PF: > { %p473_p2 = scmp.ge.s32.totalorder %s537_s8, 1  ;;  %p96_p3 = scmp.lt.s32.totalorder %s537_s8, 3 }
   0xe   : > { %p97_p4 = pnand %p473_p2, %p96_p3 }
  0x10   : > { %100 = sbr.rel (%p97_p4) target bundleno = 2375 (0x947), region = 54 }
  0x17   : > { %s103_s18 = sand.u32 1, %s467_s9   ;;  %v114_v2 = vlaneseq  ;;  %v539_v12 = vmov -1.0   ;;  %v540_v49 = vmov 0.0   ;;  %s484_s21 = sshll.u32 %s529_s6, 4 }
  0x18   : > { %s474_s19 = sshll.u32 %s103_s18, 4  ;;  %s367_s24 = scalar_lea.vmem %s675_s1, %s484_s21 }
  0x19   : > { %v578_v3 = vand.u32 127, %v114_v2  ;;  %v580_v4 = vshrl.u32 %v114_v2, 7  ;;  %s584_s20 = scalar_lea.vmem [#allocation0], %s474_s19 }
  0x1a   : > { %v476_v6 = vld [vmem:[%s584_s20 + $0x8] sm:$0xff]  ;;  %v121_v38 = vld [vmem:[%s584_s20] sm:$0xff] }
  0x1b   : > { %vm116_vm0 = vcmp.lt.s32.totalorder %v578_v3, 16  ;;  %v135_v5 = vadd.s32 8, %v580_v4  ;;  %vm162_vm4 = vcmp.eq.s32.totalorder %v578_v3, 15  ;;  %vm170_vm6 = vcmp.eq.s32.totalorder %v578_v3, 14 }
  0x1c   : > { %v163_v13 = vsel %vm162_vm4, 1.0, %v539_v12  ;;  %vm180_vm7 = vcmp.eq.s32.totalorder %v578_v3, 13  ;;  %vm190_vm8 = vcmp.eq.s32.totalorder %v578_v3, 12  ;;  %vm200_vm9 = vcmp.eq.s32.totalorder %v578_v3, 11 }
  0x1d   : > { %vm136_vm1 = vcmp.eq.s32.totalorder %v135_v5, %v578_v3  ;;  %vm141_vm2 = vcmp.le.s32.totalorder %v135_v5, %v578_v3  ;;  %vm159_vm5 = vcmp.eq.s32.totalorder %v578_v3, %v135_v5  ;;  %vm120_vm10 = vcmp.eq.s32.totalorder %v580_v4, %v578_v3 }
  0x1e   : > { %v138_v7 = vsel %vm136_vm1, %v476_v6, 0.0  ;;  %vm142_vm3 = vmand %vm141_vm2, %vm116_vm0  ;;  %v164_v14 = vsel %vm159_vm5, %v163_v13, 0.0  ;;  %v122_v39 = vsel %vm120_vm10, %v121_v38, 0.0  ;;  %vm210_vm11 = vcmp.eq.s32.totalorder %v578_v3, 10 }
  0x1f   : > { %v143_v8 = vsel %vm142_vm3, %v476_v6, 0.0  ;;  %139 = vadd.xlane.f32.xlu0 %v138_v7  ;;  %vm125_vm12 = vcmp.le.s32.totalorder %v580_v4, %v578_v3  ;;  %vm152_vm14 = vcmp.eq.s32.totalorder %v578_v3, %v580_v4  ;;  %vm220_vm15 = vcmp.eq.s32.totalorder %v578_v3, 9 }
  0x20   : > { %vm126_vm13 = vmand %vm125_vm12, %vm116_vm0  ;;  %v153_v50 = vsel %vm152_vm14, -1.0, %v540_v49  ;;  %vm240_vm0 = vcmp.eq.s32.totalorder %v578_v3, 7  ;;  %vm230_vm1 = vcmp.eq.s32.totalorder %v578_v3, 8  ;;  %vm254_vm2 = vcmp.eq.s32.totalorder %v578_v3, 6 }
  0x21   : > { %v127_v46 = vsel %vm126_vm13, %v121_v38, 0.0  ;;  %vm268_vm3 = vcmp.eq.s32.totalorder %v578_v3, 5  ;;  %vm282_vm4 = vcmp.eq.s32.totalorder %v578_v3, 4  ;;  %vm296_vm5 = vcmp.eq.s32.totalorder %v578_v3, 3 }
  0xac   : > { %v591_v9 = vpop.xlane.xlu0 %139 }
  0xad   : > { %511 = vrcp.f32 %v591_v9  ;;  %vm353_vm10 = vweird.f32 %v591_v9 }
  0xb7   : > { %v594_v10 = vpop.eup %511 }
  0xb8   : > { %v145_v11 = vmul.f32 %v594_v10, %v143_v8 }
  0xba   : > { %146 = vst [vmem:[#allocation2 + $0x8] sm:$0xff] %v145_v11 }
  0xc1   : > { %v166_v15 = vld [vmem:[#allocation2 + $0xe] ss:$0 sm:$0xff]  ;;  %v176_v18 = vld [vmem:[#allocation2 + $0xd] ss:$0 sm:$0xff]  ;;  %v186_v23 = vld [vmem:[#allocation2 + $0xc] ss:$0 sm:$0xff] }
  0xc2   : > { %v167_v16 = vxor.u32 2147483648, %v166_v15  ;;  %v177_v20 = vxor.u32 2147483648, %v176_v18  ;;  %v187_v25 = vxor.u32 2147483648, %v186_v23  ;;  %v196_v28 = vld [vmem:[#allocation2 + $0xb] ss:$0 sm:$0xff] }
  0xc3   : > { %v197_v30 = vxor.u32 2147483648, %v196_v28  ;;  %v206_v33 = vld [vmem:[#allocation2 + $0xa] ss:$0 sm:$0xff]  ;;  %v216_v40 = vld [vmem:[#allocation2 + $0x9] ss:$0 sm:$0xff] }
  0xc4   : > { %v171_v17 = vmul.f32 %v167_v16, %v164_v14  ;;  %v207_v35 = vxor.u32 2147483648, %v206_v33  ;;  %v217_v42 = vxor.u32 2147483648, %v216_v40  ;;  %v226_v54 = vld [vmem:[#allocation2 + $0x8] ss:$0 sm:$0xff] }
  0xc5   : > { %v227_v56 = vxor.u32 2147483648, %v226_v54 }
  0xc6   : > { %172 = vadd.xlane.f32.xlu0 %v171_v17 }
 0x153   : > { %v173_v19 = vpop.xlane.xlu0 %172 }
 0x154   : > { %v174_v21 = vsel %vm170_vm6, %v173_v19, %v164_v14  ;;  %vm310_vm6 = vcmp.eq.s32.totalorder %v578_v3, 2 }
 0x155   : > { %v181_v22 = vmul.f32 %v177_v20, %v174_v21 }
 0x157   : > { %182 = vadd.xlane.f32.xlu1 %v181_v22 }
 0x1e4   : > { %v183_v24 = vpop.xlane.xlu1 %182 }
 0x1e5   : > { %v184_v26 = vsel %vm180_vm7, %v183_v24, %v174_v21  ;;  %vm324_vm7 = vcmp.eq.s32.totalorder %v578_v3, 1 }
 0x1e6   : > { %v191_v27 = vmul.f32 %v187_v25, %v184_v26 }
 0x1e8   : > { %192 = vadd.xlane.f32.xlu1 %v191_v27 }
 0x275   : > { %v193_v29 = vpop.xlane.xlu1 %192 }
 0x276   : > { %v194_v31 = vsel %vm190_vm8, %v193_v29, %v184_v26  ;;  %vm337_vm8 = vcmp.eq.s32.totalorder %v578_v3, 0 }
 0x277   : > { %v201_v32 = vmul.f32 %v197_v30, %v194_v31 }
 0x279   : > { %202 = vadd.xlane.f32.xlu0 %v201_v32 }
 0x306   : > { %v203_v34 = vpop.xlane.xlu0 %202 }
 0x307   : > { %v204_v36 = vsel %vm200_vm9, %v203_v34, %v194_v31 }
 0x308   : > { %v211_v37 = vmul.f32 %v207_v35, %v204_v36 }
 0x30a   : > { %212 = vadd.xlane.f32.xlu1 %v211_v37 }
 0x30e   : > { %123 = vadd.xlane.f32.xlu1 %v122_v39 }
 0x397   : > { %v213_v41 = vpop.xlane.xlu1 %212 }
 0x398   : > { %v214_v43 = vsel %vm210_vm11, %v213_v41, %v204_v36 }
 0x399   : > { %v221_v44 = vmul.f32 %v217_v42, %v214_v43 }
 0x39b   : > { %222 = vadd.xlane.f32.xlu0 %v221_v44  ;;  %v607_v45 = vpop.xlane.xlu1 %123 }
 0x39c   : > { %513 = vrcp.f32 %v607_v45  ;;  %vm348_vm9 = vweird.f32 %v607_v45 }
 0x3a6   : > { %v614_v47 = vpop.eup %513 }
 0x3a7   : > { %v129_v48 = vmul.f32 %v614_v47, %v127_v46 }
 0x3a9   : > { %130 = vst [vmem:[#allocation2] sm:$0xff] %v129_v48 }
 0x3b0   : > { %v236_v51 = vld [vmem:[#allocation2 + $0x7] ss:$0 sm:$0xff]  ;;  %v250_v59 = vld [vmem:[#allocation2 + $0x6] ss:$0 sm:$0xff]  ;;  %v264_v4 = vld [vmem:[#allocation2 + $0x5] ss:$0 sm:$0xff] }
 0x3b1   : > { %v237_v52 = vxor.u32 2147483648, %v236_v51  ;;  %v251_v60 = vxor.u32 2147483648, %v250_v59  ;;  %v265_v6 = vxor.u32 2147483648, %v264_v4  ;;  %v278_v14 = vld [vmem:[#allocation2 + $0x4] ss:$0 sm:$0xff] }
 0x3b2   : > { %v279_v16 = vxor.u32 2147483648, %v278_v14  ;;  %v292_v22 = vld [vmem:[#allocation2 + $0x3] ss:$0 sm:$0xff]  ;;  %v306_v30 = vld [vmem:[#allocation2 + $0x2] ss:$0 sm:$0xff] }
 0x3b3   : > { %v241_v53 = vmul.f32 %v237_v52, %v153_v50  ;;  %v293_v24 = vxor.u32 2147483648, %v292_v22  ;;  %v307_v32 = vxor.u32 2147483648, %v306_v30  ;;  %v320_v38 = vld [vmem:[#allocation2 + $0x1] ss:$0 sm:$0xff]  ;;  %v333_v48 = vld [vmem:[#allocation2] ss:$0 sm:$0xff] }
 0x3b4   : > { %v321_v40 = vxor.u32 2147483648, %v320_v38 }
 0x3b5   : > { %242 = vadd.xlane.f32.xlu1 %v241_v53 }
 0x428   : > { %v223_v55 = vpop.xlane.xlu0 %222 }
 0x429   : > { %v224_v57 = vsel %vm220_vm15, %v223_v55, %v214_v43 }
 0x42a   : > { %v231_v58 = vmul.f32 %v227_v56, %v224_v57 }
 0x42c   : > { %232 = vadd.xlane.f32.xlu0 %v231_v58 }
 0x442   : > { %v243_v61 = vpop.xlane.xlu1 %242 }
 0x443   : > { %v244_v62 = vsel %vm240_vm0, %v243_v61, %v153_v50  ;;  %v334_v50 = vxor.u32 2147483648, %v333_v48 }
 0x444   : > { %v255_v63 = vmul.f32 %v251_v60, %v244_v62 }
 0x446   : > { %256 = vadd.xlane.f32.xlu1 %v255_v63 }
 0x4b9   : > { %v233_v0 = vpop.xlane.xlu0 %232 }
 0x4ba   : > { %v234_v1 = vsel %vm230_vm1, %v233_v0, %v224_v57 }
 0x4bb   : > { %v245_v2 = vmul.f32 %v237_v52, %v234_v1 }
 0x4bd   : > { %246 = vadd.xlane.f32.xlu0 %v245_v2 }
 0x4d3   : > { %v257_v5 = vpop.xlane.xlu1 %256 }
 0x4d4   : > { %v258_v7 = vsel %vm254_vm2, %v257_v5, %v244_v62 }
 0x4d5   : > { %v269_v8 = vmul.f32 %v265_v6, %v258_v7 }
 0x4d7   : > { %270 = vadd.xlane.f32.xlu1 %v269_v8 }
 0x54a   : > { %v247_v11 = vpop.xlane.xlu0 %246 }
 0x54b   : > { %v248_v12 = vsel %vm240_vm0, %v247_v11, %v234_v1 }
 0x54c   : > { %v259_v13 = vmul.f32 %v251_v60, %v248_v12 }
 0x54e   : > { %260 = vadd.xlane.f32.xlu0 %v259_v13 }
 0x564   : > { %v271_v15 = vpop.xlane.xlu1 %270 }
 0x565   : > { %v272_v17 = vsel %vm268_vm3, %v271_v15, %v258_v7 }
 0x566   : > { %v283_v18 = vmul.f32 %v279_v16, %v272_v17 }
 0x568   : > { %284 = vadd.xlane.f32.xlu1 %v283_v18 }
 0x5db   : > { %v261_v19 = vpop.xlane.xlu0 %260 }
 0x5dc   : > { %v262_v20 = vsel %vm254_vm2, %v261_v19, %v248_v12 }
 0x5dd   : > { %v273_v21 = vmul.f32 %v265_v6, %v262_v20 }
 0x5df   : > { %274 = vadd.xlane.f32.xlu0 %v273_v21 }
 0x5f5   : > { %v285_v23 = vpop.xlane.xlu1 %284 }
 0x5f6   : > { %v286_v25 = vsel %vm282_vm4, %v285_v23, %v272_v17 }
 0x5f7   : > { %v297_v26 = vmul.f32 %v293_v24, %v286_v25 }
 0x5f9   : > { %298 = vadd.xlane.f32.xlu1 %v297_v26 }
 0x66c   : > { %v275_v27 = vpop.xlane.xlu0 %274 }
 0x66d   : > { %v276_v28 = vsel %vm268_vm3, %v275_v27, %v262_v20 }
 0x66e   : > { %v287_v29 = vmul.f32 %v279_v16, %v276_v28 }
 0x670   : > { %288 = vadd.xlane.f32.xlu0 %v287_v29 }
 0x686   : > { %v299_v31 = vpop.xlane.xlu1 %298 }
 0x687   : > { %v300_v33 = vsel %vm296_vm5, %v299_v31, %v286_v25 }
 0x688   : > { %v311_v34 = vmul.f32 %v307_v32, %v300_v33 }
 0x68a   : > { %312 = vadd.xlane.f32.xlu1 %v311_v34 }
 0x6fd   : > { %v289_v35 = vpop.xlane.xlu0 %288 }
 0x6fe   : > { %v290_v36 = vsel %vm282_vm4, %v289_v35, %v276_v28 }
 0x6ff   : > { %v301_v37 = vmul.f32 %v293_v24, %v290_v36 }
 0x701   : > { %302 = vadd.xlane.f32.xlu0 %v301_v37 }
 0x717   : > { %v313_v39 = vpop.xlane.xlu1 %312 }
 0x718   : > { %v314_v41 = vsel %vm310_vm6, %v313_v39, %v300_v33 }
 0x719   : > { %v325_v42 = vmul.f32 %v321_v40, %v314_v41 }
 0x71b   : > { %326 = vadd.xlane.f32.xlu1 %v325_v42 }
 0x78e   : > { %v303_v43 = vpop.xlane.xlu0 %302 }
 0x78f   : > { %v304_v44 = vsel %vm296_vm5, %v303_v43, %v290_v36 }
 0x790   : > { %v315_v46 = vmul.f32 %v307_v32, %v304_v44 }
 0x792   : > { %316 = vadd.xlane.f32.xlu0 %v315_v46 }
 0x7a8   : > { %v327_v49 = vpop.xlane.xlu1 %326 }
 0x7a9   : > { %v328_v51 = vsel %vm324_vm7, %v327_v49, %v314_v41 }
 0x7aa   : > { %v338_v52 = vmul.f32 %v334_v50, %v328_v51 }
 0x7ac   : > { %339 = vadd.xlane.f32.xlu1 %v338_v52 }
 0x81f   : > { %v317_v53 = vpop.xlane.xlu0 %316 }
 0x820   : > { %v318_v54 = vsel %vm310_vm6, %v317_v53, %v304_v44 }
 0x821   : > { %v329_v55 = vmul.f32 %v321_v40, %v318_v54 }
 0x823   : > { %330 = vadd.xlane.f32.xlu0 %v329_v55 }
 0x839   : > { %v340_v56 = vpop.xlane.xlu1 %339 }
 0x83a   : > { %v341_v57 = vsel %vm337_vm8, %v340_v56, %v328_v51 }
 0x83b   : > { %v347_v58 = vmul.f32 %v614_v47, %v341_v57 }
 0x83d   : > { %v349_v59 = vsel %vm348_vm9, %v341_v57, %v347_v58 }
 0x83e   : > { %398 = vst [vmem:[%s367_s24] sm:$0xff] %v349_v59 }
 0x8b0   : > { %v331_v60 = vpop.xlane.xlu0 %330 }
 0x8b1   : > { %v332_v61 = vsel %vm324_vm7, %v331_v60, %v318_v54 }
 0x8b2   : > { %v342_v62 = vmul.f32 %v334_v50, %v332_v61 }
 0x8b4   : > { %343 = vadd.xlane.f32.xlu0 %v342_v62 }
 0x941   : > { %v344_v63 = vpop.xlane.xlu0 %343 }
 0x942   : > { %v345_v0 = vsel %vm337_vm8, %v344_v63, %v332_v61 }
 0x943   : > { %v352_v1 = vmul.f32 %v594_v10, %v345_v0 }
 0x945   : > { %v354_v2 = vsel %vm353_vm10, %v345_v0, %v352_v1 }
 0x946   : > { %400 = vst [vmem:[%s367_s24 + $0x8] sm:$0xff] %v354_v2 }
 0x947 PF: > { %s7_s8 = sadd.s32 1, %s537_s8   ;;  %s676_s6 = smov %s533_s7 }
 0x948   : > { %p4_p5 = scmp.ge.s32.totalorder %s7_s8, 4   ;;  %s677_s7 = smov %s679_s10 }
 0x94a   :  { %6 = sbr.rel (!%p4_p5) target bundleno = 2 (0x2), region = 135 }

// kernel: posteriors.3
= control target key start
LH: loop header
LB: loop body
LE: loop exit
PB: predicated region body
PF: predicated region fallthrough
CT: control target
= control target key end

     0   :  { %s919_s15 = smov 0   ;;  %s921_s16 = smov 0   ;;  %s988_s0 = inlined_call_operand.vmem [shape: f32[2,16,8], index: 0, kind: input, shape index: {}]   ;;  %s989_s1 = inlined_call_operand.vmem [shape: f32[2,8,128], index: 1, kind: input, shape index: {}]   ;;  %s990_s2 = inlined_call_operand.vmem [shape: f32[2,128,128], index: 2, kind: input, shape index: {}]   ;;  %s991_s3 = inlined_call_operand.vmem [shape: f32[2,16,128], index: 3, kind: output, shape index: {0}]   ;;  %s992_s4 = inlined_call_operand.vmem [shape: f32[2,16,128], index: 4, kind: output, shape index: {1}]  }
   0x1   :  { %s923_s17 = smov 0  }
   0x2 LB: > { %s34_s18 = sadd.s32 1, %s888_s16  ;;  %p730_p0 = scmp.ge.s32.totalorder %s892_s17, 1  ;;  %s892_s17 = sphi %s923_s17, %s15_s17   ;;  %s888_s16 = sphi %s921_s16, %s994_s16   ;;  %s884_s15 = sphi %s919_s15, %s993_s15  }
   0x3   : > { %p36_p1 = scmp.ge.s32.totalorder %s34_s18, 2  ;;  %p221_p2 = scmp.lt.s32.totalorder %s892_s17, 3 }
   0x5   : > { %s996_s18 = smov (%p36_p1, %s34_s18), 0  ;;  %p222_p3 = pnand %p730_p0, %p221_p2 }
   0x6   : > { %p280_p4 = scmp.lt.s32.totalorder (!%p222_p3), %s884_s15, 1  ;;  %vm329_vm0 = vcmask (!%p222_p3), 64512  }
   0x7   : > { %225 = sbr.rel (%p222_p3) target bundleno = 468 (0x1d4), region = 32 }
   0xe   : > { %s998_s15 = smov (!%p280_p4, %s884_s15), 1 }
   0xf   : > { %s733_s19 = sshll.u32 %s998_s15, 3  ;;  %s745_s20 = sshll.u32 %s998_s15, 7 }
  0x10   : > { %s295_s23 = scalar_lea.vmem %s989_s1, %s733_s19  ;;  %s943_s26 = scalar_lea.vmem %s990_s2, %s745_s20 }
  0x11   : > { %v326_v0 = vld [vmem:[%s295_s23] sm:$0xff]  ;;  %s945_s27 = sshll.u32 %s998_s15, 4  ;;  %v451_v2 = vld [vmem:[%s943_s26 + $0x8] sm:$0xff]  ;;  %v452_v4 = vld [vmem:[%s943_s26 + $0x10] sm:$0xff] }
  0x12   : > { %v450_v1 = vld [vmem:[%s943_s26] sm:$0xff]  ;;  %769 = vmatprep.subr.mxu0 %v326_v0  ;;  %s287_s30 = scalar_lea.vmem %s988_s0, %s945_s27  ;;  %v453_v5 = vld [vmem:[%s943_s26 + $0x18] sm:$0xff]  ;;  %v455_v14 = vld [vmem:[%s943_s26 + $0x28] sm:$0xff]  ;;  %v338_v31 = vmul.f32 %v326_v0, %v326_v0  ;;  %s312_s7 = scalar_lea.vmem %s991_s3, %s945_s27 }
  0x13   : > { %v809_v3 = vpack.c.bf16 %v451_v2, %v450_v1  ;;  %770 = vmatpush3.msra.mxu0 %v326_v0  ;;  %v324_v6 = vld [vmem:[%s287_s30] sm:$0xff]  ;;  %v325_v7 = vld [vmem:[%s287_s30 + $0x8] sm:$0xff]  ;;  %v813_v8 = vpack.c.bf16 %v453_v5, %v452_v4  ;;  %v456_v16 = vld [vmem:[%s943_s26 + $0x30] sm:$0xff]  ;;  %s322_s10 = scalar_lea.vmem %s992_s4, %s945_s27 }
  0x14   : > { %v327_v9 = vmul.f32 %v324_v6, %v324_v6  ;;  %771 = vmatprep.mubr.msk.f32.mxu0 %vm329_vm0, %v324_v6  ;;  %v328_v10 = vmul.f32 %v325_v7, %v325_v7  ;;  %v454_v13 = vld [vmem:[%s943_s26 + $0x20] sm:$0xff]  ;;  %v457_v17 = vld [vmem:[%s943_s26 + $0x38] sm:$0xff]  ;;  %v459_v20 = vld [vmem:[%s943_s26 + $0x48] sm:$0xff]  ;;  %v339_v32 = vrot.slane %v338_v31, 4 }
  0x15   : > { %810 = vmatprep.subr.bf16.mxu1 %v809_v3  ;;  %772 = vmatmul.mubr.msk.f32.vlgmr.msra.gmra.mrb[0].mxu0 %vm329_vm0, %v325_v7  ;;  %v817_v15 = vpack.c.bf16 %v455_v14, %v454_v13  ;;  %v821_v18 = vpack.c.bf16 %v457_v17, %v456_v16  ;;  %v458_v19 = vld [vmem:[%s943_s26 + $0x40] sm:$0xff]  ;;  %v460_v22 = vld [vmem:[%s943_s26 + $0x50] sm:$0xff]  ;;  %v461_v23 = vld [vmem:[%s943_s26 + $0x58] sm:$0xff] }
  0x16   : > { %812 = vmatpush3.bf16.msra.mxu1 %v809_v3  ;;  %v330_v11 = vsel %vm329_vm0, %v327_v9, 0.0  ;;  %v333_v12 = vsel %vm329_vm0, %v328_v10, 0.0  ;;  %v825_v21 = vpack.c.bf16 %v459_v20, %v458_v19  ;;  %v829_v24 = vpack.c.bf16 %v461_v23, %v460_v22  ;;  %v462_v25 = vld [vmem:[%s943_s26 + $0x60] sm:$0xff]  ;;  %v463_v26 = vld [vmem:[%s943_s26 + $0x68] sm:$0xff]  ;;  %v464_v28 = vld [vmem:[%s943_s26 + $0x70] sm:$0xff] }
  0x17   : > { %814 = vmatprep.subr.bf16.mxu1 %v813_v8  ;;  %331 = vadd.xlane.f32.xlu0 %v330_v11  ;;  %v833_v27 = vpack.c.bf16 %v463_v26, %v462_v25  ;;  %v465_v29 = vld [vmem:[%s943_s26 + $0x78] sm:$0xff]  ;;  %v340_v33 = vadd.f32 %v339_v32, %v338_v31 }
  0x18   : > { %v837_v30 = vpack.c.bf16 %v465_v29, %v464_v28 }
  0x19   : > { %v341_v34 = vrot.slane %v340_v33, 2 }
  0x1a   : > { %816 = vmatpush3.bf16.msra.mxu1 %v813_v8 }
  0x1b   : > { %334 = vadd.xlane.f32.xlu0 %v333_v12  ;;  %818 = vmatprep.subr.bf16.mxu1 %v817_v15  ;;  %v342_v35 = vadd.f32 %v341_v34, %v340_v33 }
  0x1d   : > { %v343_v36 = vrot.slane %v342_v35, 1 }
  0x1e   : > { %820 = vmatpush3.bf16.msra.mxu1 %v817_v15 }
  0x1f   : > { %822 = vmatprep.subr.bf16.mxu1 %v821_v18  ;;  %v344_v38 = vadd.f32 %v343_v36, %v342_v35 }
  0x21   : > { %v345_v40 = vmul.f32 -0.22222222, %v344_v38 }
  0x22   : > { %824 = vmatpush3.bf16.msra.mxu1 %v821_v18 }
  0x23   : > { %826 = vmatprep.subr.bf16.mxu1 %v825_v21  ;;  %v346_v42 = vadd.f32 -0.22314355, %v345_v40 }
  0x26   : > { %828 = vmatpush3.bf16.msra.mxu1 %v825_v21 }
  0x27   : > { %830 = vmatprep.subr.bf16.mxu1 %v829_v24 }
  0x2a   : > { %832 = vmatpush3.bf16.msra.mxu1 %v829_v24 }
  0x2b   : > { %834 = vmatprep.subr.bf16.mxu1 %v833_v27 }
  0x2e   : > { %836 = vmatpush3.bf16.msra.mxu1 %v833_v27 }
  0x2f   : > { %838 = vmatprep.subr.bf16.mxu1 %v837_v30 }
  0x32   : > { %840 = vmatpush3.bf16.msra.mxu1 %v837_v30 }
  0xa4   : > { %v332_v37 = vpop.xlane.xlu0 %331 }
  0xa5   : > { %v336_v43 = vmul.f32 -0.22222222, %v332_v37 }
  0xa7   : > { %v428_v48 = vadd.f32 %v346_v42, %v336_v43 }
  0xa8   : > { %v335_v39 = vpop.xlane.xlu0 %334 }
  0xa9   : > { %v337_v41 = vmul.f32 -0.22222222, %v335_v39 }
  0xab   : > { %v429_v44 = vadd.f32 %v346_v42, %v337_v41 }
  0xe8   : > { %v773_v45 = vpop.f32.mrb[0].mxu0 }
  0xe9   : > { %v431_v46 = vmul.f32 0.44444445, %v773_v45  ;;  %v419_v47 = vpop.f32.mrb[1].mxu0 }
  0xea   : > { %v430_v49 = vmul.f32 0.44444445, %v419_v47 }
  0xeb   : > { %v433_v50 = vadd.f32 %v431_v46, %v429_v44 }
  0xec   : > { %v432_v51 = vadd.f32 %v430_v49, %v428_v48 }
  0xed   : > { %v435_v52 = vmin.f32 %v433_v50, -0.22314355 }
  0xee   : > { %v434_v53 = vmin.f32 %v432_v51, -0.22314355 }
  0xef   : > { %v438_v54 = vmul.f32 1.442695, %v435_v52 }
  0xf0   : > { %v436_v55 = vmul.f32 1.442695, %v434_v53 }
  0xf1   : > { %866 = vpow2.f32 %v438_v54 }
  0xf2   : > { %868 = vpow2.f32 %v436_v55 }
  0xfb   : > { %v867_v56 = vpop.eup %866 }
  0xfc   : > { %v869_v57 = vpop.eup %868  ;;  %441 = vst [vmem:[%s312_s7 + $0x8] sm:$0xff] %v867_v56 }
  0xfd   : > { %440 = vst [vmem:[%s312_s7] sm:$0xff] %v869_v57  ;;  %806 = vmatprep.mubr.f32.mxu1 %v869_v57 }
  0xfe   : > { %807 = vmatmul.mubr.f32.vlgmr.msra.gmra.mrb[0].mxu1 %v867_v56 }
 0x1d1   : > { %v808_v58 = vpop.f32.mrb[0].mxu1 }
 0x1d2   : > { %v534_v59 = vpop.f32.mrb[1].mxu1  ;;  %546 = vst [vmem:[%s322_s10 + $0x8] sm:$0xff] %v808_v58 }
 0x1d3   : > { %545 = vst [vmem:[%s322_s10] sm:$0xff] %v534_v59 }
 0x1d4 PF: > { %s15_s17 = sadd.s32 1, %s892_s17   ;;  %s993_s15 = smov %s888_s16 }
 0x1d5   : > { %p12_p5 = scmp.ge.s32.totalorder %s15_s17, 4   ;;  %s994_s16 = smov %s996_s18 }
 0x1d7   :  { %14 = sbr.rel (!%p12_p5) target bundleno = 2 (0x2), region = 85 }

</bundles_post_ra>
